<compile_context>
chip_gen: v5e
topology: v5e:2x2
jax: 0.10.0
libtpu: 0.0.40
codegen_flags: <defaults>
</compile_context>

<pallas_src>
import jax
import jax.numpy as jnp
from jax.experimental import pallas as pl
from jax.experimental.pallas import tpu as pltpu

B, CIN, HS, WS = 2, 3, 32, 32          # input: (B, 3, 32, 32) NCHW
COUT = 16
HP, WP = HS // 2, WS // 2              # pooled spatial: 16 x 16
NPOOL = B * HP * WP                    # 512 pooled pixels
NCORN = 4                              # the four (hs, ws) corners of each 2x2 pool window
K_TAPS = 9 * CIN                       # 27 = 3x3 taps * 3 input channels
D1, D2 = 128, 10

_VMEM = pl.BlockSpec(memory_space=pltpu.MemorySpace.VMEM)


def conv_relu_pool_kernel(p_ref, w_ref, b_ref, o_ref):
    """Fused conv3x3 + bias + ReLU + 2x2 maxpool, single block, single matmul.

    p_ref: (4*NPOOL, 27) bf16  im2col patches; 512-row slabs = the four pool corners
    w_ref: (27, 16)      bf16  conv weight, rows ordered (kh, kw, cin)
    b_ref: (1, 16)       f32
    o_ref: (NPOOL, 16)   bf16  pooled activations, rows = (b, hp, wp), lanes = channel
    """
    # One merged K=27 MXU matmul for all 4 corners x 512 pooled pixels (one weight
    # push / one result drain instead of four).
    m = jnp.dot(p_ref[...], w_ref[...], preferred_element_type=jnp.float32)   # (2048,16) f32
    # 2x2 maxpool = elementwise max over the four corner slabs (static, sublane-aligned
    # slices at multiples of 512 -> no relayout; VPU-only work).
    pooled = jnp.maximum(jnp.maximum(m[0:NPOOL], m[NPOOL:2 * NPOOL]),
                         jnp.maximum(m[2 * NPOOL:3 * NPOOL], m[3 * NPOOL:4 * NPOOL]))
    # relu(maxpool(conv) + bias) == maxpool(relu(conv + bias)): relu is monotone and the
    # per-channel bias is shared by all four corners.  Elementwise math kept in f32.
    o_ref[...] = jnp.maximum(pooled + b_ref[...], 0.0).astype(o_ref.dtype)


def mlp_kernel(x_ref, w1_ref, b1_ref, w2_ref, b2_ref, o_ref):
    """fc1 (bf16 MXU, f32 acc) + ReLU + fc2 (exact f32), fully VMEM resident."""
    h = jnp.dot(x_ref[...], w1_ref[...], preferred_element_type=jnp.float32)  # (B,128)
    h = jnp.maximum(h + b1_ref[...], 0.0)
    o_ref[...] = jnp.dot(h, w2_ref[...], preferred_element_type=jnp.float32) + b2_ref[...]


def prepare_params(params):
    """One-time, OFFLINE parameter re-layout (run outside the jitted forward).

    - conv weight -> (27, 16) bf16, row order (kh, kw, cin) to match the im2col taps.
    - fc1 weight rows permuted from PyTorch's NCHW flatten order (c, hp, wp) to the
      kernel's NHWC flatten order (hp, wp, c), cast to bf16.
    - biases reshaped to (1, N) f32.
    """
    conv_w, conv_b, fc1_w, fc1_b, fc2_w, fc2_b = params
    w_mat = conv_w.reshape(K_TAPS, COUT).astype(jnp.bfloat16)
    fc1_w_nhwc = (fc1_w.reshape(COUT, HP, WP, D1)
                  .transpose(1, 2, 0, 3)
                  .reshape(HP * WP * COUT, D1)
                  .astype(jnp.bfloat16))
    return (w_mat,
            conv_b.reshape(1, COUT).astype(jnp.float32),
            fc1_w_nhwc,
            fc1_b.reshape(1, D1).astype(jnp.float32),
            fc2_w.astype(jnp.float32),
            fc2_b.reshape(1, D2).astype(jnp.float32))


def _im2col_pool_corners(x_nchw):
    """Layout prep (one small bf16 XLA gather fusion, ~110 KiB): NCHW->NHWC, zero-pad
    by 1, and gather the 27-wide 3x3 patches for the four (hs, ws) corners of every
    2x2 pooling window.  Returns (4*NPOOL, 27) bf16; 512-row slabs are the corners,
    rows within a slab are ordered (b, hp, wp)."""
    x = jnp.transpose(x_nchw, (0, 2, 3, 1)).astype(jnp.bfloat16)        # (B,32,32,3)
    xp = jnp.pad(x, ((0, 0), (1, 1), (1, 1), (0, 0)))                   # (B,34,34,3)
    corners = []
    for hs in (0, 1):
        for ws in (0, 1):
            taps = [
                xp[:, hs + kh: hs + kh + 2 * HP: 2,
                      ws + kw: ws + kw + 2 * WP: 2, :]                  # (B,16,16,3)
                for kh in range(3) for kw in range(3)
            ]
            corners.append(jnp.concatenate(taps, axis=-1))              # (B,16,16,27)
    patches = jnp.stack(corners, axis=0)                                # (4,B,16,16,27)
    return patches.reshape(NCORN * NPOOL, K_TAPS)


@jax.jit
def my_model_forward(x_nchw, prepped):
    """Forward pass; `prepped` comes from prepare_params() (no per-call re-layouts)."""
    w_mat, conv_b2, fc1_w_nhwc, fc1_b2, fc2_w, fc2_b2 = prepped

    patches = _im2col_pool_corners(x_nchw)                              # (2048, 27) bf16

    # Kernel 1: conv3x3 + bias + ReLU + 2x2 maxpool, single block (no grid),
    # everything VMEM resident (~0.8 MiB incl. lane padding).
    pooled = pl.pallas_call(
        conv_relu_pool_kernel,
        out_shape=jax.ShapeDtypeStruct((NPOOL, COUT), jnp.bfloat16),
        in_specs=[_VMEM, _VMEM, _VMEM],
        out_specs=_VMEM,
    )(patches, w_mat, conv_b2)

    # Row-major flatten (b, hp, wp, c) -> (B, 4096); tiny bf16 XLA reshape that
    # matches the offline-permuted fc1_w rows exactly.
    flat = pooled.reshape(B, HP * WP * COUT)

    # Kernel 2: fc1 + ReLU + fc2, everything VMEM resident (fc1_w bf16 ~1 MiB).
    out = pl.pallas_call(
        mlp_kernel,
        out_shape=jax.ShapeDtypeStruct((B, D2), jnp.float32),
        in_specs=[_VMEM, _VMEM, _VMEM, _VMEM, _VMEM],
        out_specs=_VMEM,
    )(flat, fc1_w_nhwc, fc1_b2, fc2_w, fc2_b2)
    return out


def reference_forward(x_nchw, params):
    """Pure-JAX reference (f32, highest precision) for the correctness check."""
    conv_w, conv_b, fc1_w, fc1_b, fc2_w, fc2_b = params
    x = jnp.transpose(x_nchw, (0, 2, 3, 1))
    y = jax.lax.conv_general_dilated(
        x, conv_w, window_strides=(1, 1), padding="SAME",
        dimension_numbers=("NHWC", "HWIO", "NHWC"),
        precision=jax.lax.Precision.HIGHEST)
    y = jnp.maximum(y + conv_b, 0.0)
    p = jax.lax.reduce_window(y, -jnp.inf, jax.lax.max,
                              (1, 2, 2, 1), (1, 2, 2, 1), "VALID")
    flat = jnp.transpose(p, (0, 3, 1, 2)).reshape(x.shape[0], -1)       # NCHW flatten
    h = jnp.maximum(flat @ fc1_w + fc1_b, 0.0)
    return h @ fc2_w + fc2_b


if __name__ == "__main__":
    key = jax.random.PRNGKey(0)
    ks = jax.random.split(key, 7)

    # fc1 expects 16 * 16 * 16 = 4096 features -> 32x32 spatial input, 3 channels.
    x = jax.random.normal(ks[0], (B, CIN, HS, WS), jnp.float32)

    # Deterministic synthetic parameters (shapes from the module's __init__).
    conv_w = jax.random.normal(ks[1], (3, 3, CIN, COUT), jnp.float32) * 0.1   # HWIO
    conv_b = jax.random.normal(ks[2], (COUT,), jnp.float32) * 0.1
    fc1_w = jax.random.normal(ks[3], (COUT * HP * WP, D1), jnp.float32) * 0.02
    fc1_b = jax.random.normal(ks[4], (D1,), jnp.float32) * 0.02
    fc2_w = jax.random.normal(ks[5], (D1, D2), jnp.float32) * 0.05
    fc2_b = jax.random.normal(ks[6], (D2,), jnp.float32) * 0.05
    params = (conv_w, conv_b, fc1_w, fc1_b, fc2_w, fc2_b)

    # One-time parameter re-layout, hoisted out of the forward pass (perf review #1).
    prepped = prepare_params(params)

    out = jax.block_until_ready(my_model_forward(x, prepped))
    assert out.shape == (B, D2) and out.dtype == jnp.float32

    ref = jax.block_until_ready(reference_forward(x, params))
    if not jnp.allclose(out, ref, atol=5e-2, rtol=5e-2):
        raise SystemExit(
            f"mismatch: max abs err {float(jnp.max(jnp.abs(out - ref)))}")
    print("KERNEL_OK")
</pallas_src>

<mosaic_0001>
module attributes {stable_mosaic.version = 11 : i64} {
  func.func @conv_relu_pool_kernel(%arg0: memref<2048x27xbf16, #tpu.memory_space<vmem>>, %arg1: memref<27x16xbf16, #tpu.memory_space<vmem>>, %arg2: memref<1x16xf32, #tpu.memory_space<vmem>>, %arg3: memref<512x16xbf16, #tpu.memory_space<vmem>>) attributes {dimension_semantics = [], scalar_prefetch = 0 : i64, scratch_operands = 0 : i64, tpu.core_type = #tpu.core_type<tc>} {
    %c0 = arith.constant 0 : index
    %c0_0 = arith.constant 0 : index
    %0 = vector.load %arg0[%c0, %c0_0] : memref<2048x27xbf16, #tpu.memory_space<vmem>>, vector<2048x27xbf16>
    %c0_1 = arith.constant 0 : index
    %c0_2 = arith.constant 0 : index
    %1 = vector.load %arg1[%c0_1, %c0_2] : memref<27x16xbf16, #tpu.memory_space<vmem>>, vector<27x16xbf16>
    %cst = arith.constant dense<0.000000e+00> : vector<2048x16xf32>
    %2 = tpu.matmul %0, %1, %cst {dimension_numbers = #tpu.dot_dimension_numbers<[1], [0], [0], [1], [0, 0, 1, 1], [], []>} : vector<2048x27xbf16>, vector<27x16xbf16>, vector<2048x16xf32> -> vector<2048x16xf32>
    %3 = vector.extract_strided_slice %2 {offsets = [0, 0], sizes = [512, 16], strides = [1, 1]} : vector<2048x16xf32> to vector<512x16xf32>
    %4 = vector.extract_strided_slice %2 {offsets = [512, 0], sizes = [512, 16], strides = [1, 1]} : vector<2048x16xf32> to vector<512x16xf32>
    %5 = arith.maximumf %3, %4 : vector<512x16xf32>
    %6 = vector.extract_strided_slice %2 {offsets = [1024, 0], sizes = [512, 16], strides = [1, 1]} : vector<2048x16xf32> to vector<512x16xf32>
    %7 = vector.extract_strided_slice %2 {offsets = [1536, 0], sizes = [512, 16], strides = [1, 1]} : vector<2048x16xf32> to vector<512x16xf32>
    %8 = arith.maximumf %6, %7 : vector<512x16xf32>
    %9 = arith.maximumf %5, %8 : vector<512x16xf32>
    %c0_3 = arith.constant 0 : index
    %c0_4 = arith.constant 0 : index
    %10 = vector.load %arg2[%c0_3, %c0_4] : memref<1x16xf32, #tpu.memory_space<vmem>>, vector<1x16xf32>
    %11 = vector.broadcast %10 : vector<1x16xf32> to vector<512x16xf32>
    %12 = arith.addf %9, %11 : vector<512x16xf32>
    %cst_5 = arith.constant 0.000000e+00 : f32
    %13 = vector.broadcast %cst_5 : f32 to vector<512x16xf32>
    %14 = arith.maximumf %12, %13 : vector<512x16xf32>
    %15 = arith.truncf %14 : vector<512x16xf32> to vector<512x16xbf16>
    %c0_6 = arith.constant 0 : index
    %c0_7 = arith.constant 0 : index
    %16 = vector.load %arg3[%c0_6, %c0_7] : memref<512x16xbf16, #tpu.memory_space<vmem>>, vector<512x16xbf16>
    tpu.vector_store %arg3[%c0_6, %c0_7], %15 {strides = array<i32>} : memref<512x16xbf16, #tpu.memory_space<vmem>>, vector<512x16xbf16>,
    return
  }
}

module attributes {stable_mosaic.version = 11 : i64} {
  func.func @mlp_kernel(%arg0: memref<2x4096xbf16, #tpu.memory_space<vmem>>, %arg1: memref<4096x128xbf16, #tpu.memory_space<vmem>>, %arg2: memref<1x128xf32, #tpu.memory_space<vmem>>, %arg3: memref<128x10xf32, #tpu.memory_space<vmem>>, %arg4: memref<1x10xf32, #tpu.memory_space<vmem>>, %arg5: memref<2x10xf32, #tpu.memory_space<vmem>>) attributes {dimension_semantics = [], scalar_prefetch = 0 : i64, scratch_operands = 0 : i64, tpu.core_type = #tpu.core_type<tc>} {
    %c0 = arith.constant 0 : index
    %c0_0 = arith.constant 0 : index
    %0 = vector.load %arg0[%c0, %c0_0] : memref<2x4096xbf16, #tpu.memory_space<vmem>>, vector<2x4096xbf16>
    %c0_1 = arith.constant 0 : index
    %c0_2 = arith.constant 0 : index
    %1 = vector.load %arg1[%c0_1, %c0_2] : memref<4096x128xbf16, #tpu.memory_space<vmem>>, vector<4096x128xbf16>
    %cst = arith.constant dense<0.000000e+00> : vector<2x128xf32>
    %2 = tpu.matmul %0, %1, %cst {dimension_numbers = #tpu.dot_dimension_numbers<[1], [0], [0], [1], [0, 0, 1, 1], [], []>} : vector<2x4096xbf16>, vector<4096x128xbf16>, vector<2x128xf32> -> vector<2x128xf32>
    %c0_3 = arith.constant 0 : index
    %c0_4 = arith.constant 0 : index
    %3 = vector.load %arg2[%c0_3, %c0_4] : memref<1x128xf32, #tpu.memory_space<vmem>>, vector<1x128xf32>
    %4 = vector.broadcast %3 : vector<1x128xf32> to vector<2x128xf32>
    %5 = arith.addf %2, %4 : vector<2x128xf32>
    %cst_5 = arith.constant 0.000000e+00 : f32
    %6 = vector.broadcast %cst_5 : f32 to vector<2x128xf32>
    %7 = arith.maximumf %5, %6 : vector<2x128xf32>
    %c0_6 = arith.constant 0 : index
    %c0_7 = arith.constant 0 : index
    %8 = vector.load %arg3[%c0_6, %c0_7] : memref<128x10xf32, #tpu.memory_space<vmem>>, vector<128x10xf32>
    %cst_8 = arith.constant dense<0.000000e+00> : vector<2x10xf32>
    %9 = tpu.matmul %7, %8, %cst_8 {dimension_numbers = #tpu.dot_dimension_numbers<[1], [0], [0], [1], [0, 0, 1, 1], [], []>} : vector<2x128xf32>, vector<128x10xf32>, vector<2x10xf32> -> vector<2x10xf32>
    %c0_9 = arith.constant 0 : index
    %c0_10 = arith.constant 0 : index
    %10 = vector.load %arg4[%c0_9, %c0_10] : memref<1x10xf32, #tpu.memory_space<vmem>>, vector<1x10xf32>
    %11 = vector.broadcast %10 : vector<1x10xf32> to vector<2x10xf32>
    %12 = arith.addf %9, %11 : vector<2x10xf32>
    %c0_11 = arith.constant 0 : index
    %c0_12 = arith.constant 0 : index
    %13 = vector.load %arg5[%c0_11, %c0_12] : memref<2x10xf32, #tpu.memory_space<vmem>>, vector<2x10xf32>
    tpu.vector_store %arg5[%c0_11, %c0_12], %12 {strides = array<i32>} : memref<2x10xf32, #tpu.memory_space<vmem>>, vector<2x10xf32>,
    return
  }
}

</mosaic_0001>

<bundles_post_ra>
// kernel: my_model_forward.2
= control target key start
LH: loop header
LB: loop body
LE: loop exit
PB: predicated region body
PF: predicated region fallthrough
CT: control target
= control target key end

     0   :  { %vm1311_vm0 = vcmask 1044480   ;;  %vm1312_vm1 = vcmask 1045504   ;;  %v3211_v2 = vmov 65535   ;;  %vm926_vm2 = vcmask 220160   ;;  %s4083_s1 = inlined_call_operand.vmem [shape: bf16[27,16], index: 1, kind: input, shape index: {}]   ;;  %s4084_s0 = inlined_call_operand.vmem [shape: bf16[2048,27], index: 0, kind: input, shape index: {}]   ;;  %s4085_s2 = inlined_call_operand.vmem [shape: f32[1,16], index: 2, kind: input, shape index: {}]   ;;  %s4086_s3 = inlined_call_operand.vmem [shape: bf16[512,16], index: 3, kind: output, shape index: {}]  }
   0x1   :  { %v2942_v0 = vld [vmem:[%s4083_s1 + $0x8] sm:$0xf]  ;;  %v3201_v1 = vld [vmem:[%s4083_s1 + $0x8] sm:$0x30]  ;;  %v1313_v3 = vsel %vm1311_vm0, 4294967295, %v3211_v2  ;;  %v3200_v7 = vld [vmem:[%s4083_s1] sm:$0xff] }
   0x2   :  { %v2943_v4 = vor.u32 %v3201_v1, %v2942_v0  ;;  %v1314_v5 = vsel %vm1312_vm1, %v1313_v3, 0  ;;  %v3072_v8 = vld [vmem:[%s4084_s0] sm:$0xff]  ;;  %v3073_v12 = vld [vmem:[%s4084_s0 + $0x8] sm:$0xff]  ;;  %v3074_v16 = vld [vmem:[%s4084_s0 + $0x10] sm:$0xff]  ;;  %vm2355_vm3 = vcmask 125952  }
   0x3   :  { %v3104_v9 = vld [vmem:[%s4084_s0 + $0x100] sm:$0xff]  ;;  %v3105_v13 = vld [vmem:[%s4084_s0 + $0x108] sm:$0xff]  ;;  %v3106_v17 = vld [vmem:[%s4084_s0 + $0x110] sm:$0xff] }
   0x4   :  { %v1316_v6 = vand.u32 %v2943_v4, %v1314_v5  ;;  %v3136_v10 = vld [vmem:[%s4084_s0 + $0x200] sm:$0xff]  ;;  %v3137_v14 = vld [vmem:[%s4084_s0 + $0x208] sm:$0xff]  ;;  %v3138_v18 = vld [vmem:[%s4084_s0 + $0x210] sm:$0xff] }
   0x5   :  { %v3168_v11 = vld [vmem:[%s4084_s0 + $0x300] sm:$0xff]  ;;  %v3169_v15 = vld [vmem:[%s4084_s0 + $0x308] sm:$0xff]  ;;  %v3170_v19 = vld [vmem:[%s4084_s0 + $0x310] sm:$0xff] }
   0x6   :  { %1324 = vmatpush.bf16.msra.mxu0 %v1316_v6  ;;  %3202 = vmatpush.bf16.msra.mxu1 %v1316_v6  ;;  %v3075_v20 = vld [vmem:[%s4084_s0 + $0x18] sm:$0xff]  ;;  %v3076_v24 = vld [vmem:[%s4084_s0 + $0x20] sm:$0xff]  ;;  %v3077_v28 = vld [vmem:[%s4084_s0 + $0x28] sm:$0xff] }
   0x7   :  { %3203 = vmatpush.bf16.msra.mxu2 %v1316_v6  ;;  %3204 = vmatpush.bf16.msra.mxu3 %v1316_v6  ;;  %v3107_v21 = vld [vmem:[%s4084_s0 + $0x118] sm:$0xff]  ;;  %v3108_v25 = vld [vmem:[%s4084_s0 + $0x120] sm:$0xff]  ;;  %v3109_v29 = vld [vmem:[%s4084_s0 + $0x128] sm:$0xff] }
   0x8   :  { %v3139_v22 = vld [vmem:[%s4084_s0 + $0x218] sm:$0xff]  ;;  %v3140_v26 = vld [vmem:[%s4084_s0 + $0x220] sm:$0xff]  ;;  %v3141_v30 = vld [vmem:[%s4084_s0 + $0x228] sm:$0xff] }
   0x9   :  { %v3171_v23 = vld [vmem:[%s4084_s0 + $0x318] sm:$0xff]  ;;  %v3172_v27 = vld [vmem:[%s4084_s0 + $0x320] sm:$0xff]  ;;  %v3173_v31 = vld [vmem:[%s4084_s0 + $0x328] sm:$0xff] }
   0xa   :  { %1325 = vmatpush.bf16.msra.mxu0 %v3200_v7  ;;  %3205 = vmatpush.bf16.msra.mxu1 %v3200_v7  ;;  %v3078_v32 = vld [vmem:[%s4084_s0 + $0x30] sm:$0xff]  ;;  %v3079_v36 = vld [vmem:[%s4084_s0 + $0x38] sm:$0xff]  ;;  %v3080_v40 = vld [vmem:[%s4084_s0 + $0x40] sm:$0xff] }
   0xb   :  { %3206 = vmatpush.bf16.msra.mxu2 %v3200_v7  ;;  %3207 = vmatpush.bf16.msra.mxu3 %v3200_v7  ;;  %v3110_v33 = vld [vmem:[%s4084_s0 + $0x130] sm:$0xff]  ;;  %v3111_v37 = vld [vmem:[%s4084_s0 + $0x138] sm:$0xff]  ;;  %v3112_v41 = vld [vmem:[%s4084_s0 + $0x140] sm:$0xff] }
   0xc   :  { %v3142_v34 = vld [vmem:[%s4084_s0 + $0x230] sm:$0xff]  ;;  %v3143_v38 = vld [vmem:[%s4084_s0 + $0x238] sm:$0xff]  ;;  %v3144_v44 = vld [vmem:[%s4084_s0 + $0x240] sm:$0xff] }
   0xd   :  { %2944 = vmatmul.msk.bf16.vlgmr.msra.gmra.mxu0 %vm926_vm2, %v3072_v8  ;;  %2976 = vmatmul.msk.bf16.vlgmr.msra.gmra.mxu1 %vm926_vm2, %v3104_v9  ;;  %v3174_v35 = vld [vmem:[%s4084_s0 + $0x330] sm:$0xff]  ;;  %v3175_v39 = vld [vmem:[%s4084_s0 + $0x338] sm:$0xff]  ;;  %v3176_v45 = vld [vmem:[%s4084_s0 + $0x340] sm:$0xff] }
   0xe   :  { %3008 = vmatmul.msk.bf16.vlgmr.msra.gmra.mxu2 %vm926_vm2, %v3136_v10  ;;  %3040 = vmatmul.msk.bf16.vlgmr.msra.gmra.mxu3 %vm926_vm2, %v3168_v11  ;;  %v3388_v50 = vld [vmem:[%s4085_s2] ss:$0 sm:$0xff]  ;;  %v3081_v58 = vld [vmem:[%s4084_s0 + $0x48] sm:$0xff] }
   0xf   :  { %v3113_v59 = vld [vmem:[%s4084_s0 + $0x148] sm:$0xff] }
  0x10   :  { %v3145_v1 = vld [vmem:[%s4084_s0 + $0x248] sm:$0xff] }
  0x11   :  { %v3177_v2 = vld [vmem:[%s4084_s0 + $0x348] sm:$0xff] }
  0x1d   :  { %2945 = vmatmul.msk.bf16.gmra.mxu0 %vm926_vm2, %v3073_v12  ;;  %2977 = vmatmul.msk.bf16.gmra.mxu1 %vm926_vm2, %v3105_v13 }
  0x1e   :  { %3009 = vmatmul.msk.bf16.gmra.mxu2 %vm926_vm2, %v3137_v14  ;;  %3041 = vmatmul.msk.bf16.gmra.mxu3 %vm926_vm2, %v3169_v15 }
  0x2d   :  { %2946 = vmatmul.msk.bf16.gmra.mxu0 %vm926_vm2, %v3074_v16  ;;  %2978 = vmatmul.msk.bf16.gmra.mxu1 %vm926_vm2, %v3106_v17 }
  0x2e   :  { %3010 = vmatmul.msk.bf16.gmra.mxu2 %vm926_vm2, %v3138_v18  ;;  %3042 = vmatmul.msk.bf16.gmra.mxu3 %vm926_vm2, %v3170_v19  ;;  %v3082_v18 = vld [vmem:[%s4084_s0 + $0x50] sm:$0xff] }
  0x2f   :  { %v3114_v19 = vld [vmem:[%s4084_s0 + $0x150] sm:$0xff] }
  0x3d   :  { %2947 = vmatmul.msk.bf16.gmra.mxu0 %vm926_vm2, %v3075_v20  ;;  %2979 = vmatmul.msk.bf16.gmra.mxu1 %vm926_vm2, %v3107_v21 }
  0x3e   :  { %3011 = vmatmul.msk.bf16.gmra.mxu2 %vm926_vm2, %v3139_v22  ;;  %3043 = vmatmul.msk.bf16.gmra.mxu3 %vm926_vm2, %v3171_v23 }
  0x4d   :  { %2948 = vmatmul.msk.bf16.gmra.mxu0 %vm926_vm2, %v3076_v24  ;;  %2980 = vmatmul.msk.bf16.gmra.mxu1 %vm926_vm2, %v3108_v25  ;;  %v3146_v25 = vld [vmem:[%s4084_s0 + $0x250] sm:$0xff] }
  0x4e   :  { %3012 = vmatmul.msk.bf16.gmra.mxu2 %vm926_vm2, %v3140_v26  ;;  %3044 = vmatmul.msk.bf16.gmra.mxu3 %vm926_vm2, %v3172_v27  ;;  %v3178_v26 = vld [vmem:[%s4084_s0 + $0x350] sm:$0xff] }
  0x5d   :  { %2949 = vmatmul.msk.bf16.gmra.mxu0 %vm926_vm2, %v3077_v28  ;;  %2981 = vmatmul.msk.bf16.gmra.mxu1 %vm926_vm2, %v3109_v29 }
  0x5e   :  { %3013 = vmatmul.msk.bf16.gmra.mxu2 %vm926_vm2, %v3141_v30  ;;  %3045 = vmatmul.msk.bf16.gmra.mxu3 %vm926_vm2, %v3173_v31 }
  0x6d   :  { %2950 = vmatmul.msk.bf16.gmra.mxu0 %vm926_vm2, %v3078_v32  ;;  %2982 = vmatmul.msk.bf16.gmra.mxu1 %vm926_vm2, %v3110_v33 }
  0x6e   :  { %3014 = vmatmul.msk.bf16.gmra.mxu2 %vm926_vm2, %v3142_v34  ;;  %3046 = vmatmul.msk.bf16.gmra.mxu3 %vm926_vm2, %v3174_v35 }
  0x7d   :  { %2951 = vmatmul.msk.bf16.gmra.mxu0 %vm926_vm2, %v3079_v36  ;;  %2983 = vmatmul.msk.bf16.gmra.mxu1 %vm926_vm2, %v3111_v37 }
  0x7e   :  { %3015 = vmatmul.msk.bf16.gmra.mxu2 %vm926_vm2, %v3143_v38  ;;  %3047 = vmatmul.msk.bf16.gmra.mxu3 %vm926_vm2, %v3175_v39 }
  0x8a   :  { %v1327_v42 = vpop.f32.mrf.mxu0  ;;  %v1487_v43 = vpop.f32.mrf.mxu1 }
  0x8b   :  { %v1967_v46 = vmax.f32 %v1327_v42, %v1487_v43  ;;  %v3083_v42 = vld [vmem:[%s4084_s0 + $0x58] sm:$0xff] }
  0x8c   :  { %v3115_v43 = vld [vmem:[%s4084_s0 + $0x158] sm:$0xff] }
  0x8d   :  { %2952 = vmatmul.msk.bf16.gmra.mxu0 %vm926_vm2, %v3080_v40  ;;  %2984 = vmatmul.msk.bf16.gmra.mxu1 %vm926_vm2, %v3112_v41 }
  0x8e   :  { %3016 = vmatmul.msk.bf16.gmra.mxu2 %vm926_vm2, %v3144_v44  ;;  %3048 = vmatmul.msk.bf16.gmra.mxu3 %vm926_vm2, %v3176_v45 }
  0x91   :  { %v1647_v47 = vpop.f32.mrf.mxu2  ;;  %v1807_v48 = vpop.f32.mrf.mxu3 }
  0x92   :  { %v2031_v49 = vmax.f32 %v1647_v47, %v1807_v48  ;;  %v1329_v51 = vpop.f32.mrf.mxu0  ;;  %v1489_v52 = vpop.f32.mrf.mxu1 }
  0x93   :  { %v1968_v61 = vmax.f32 %v1329_v51, %v1489_v52  ;;  %v3179_v51 = vld [vmem:[%s4084_s0 + $0x358] sm:$0xff] }
  0x94   :  { %v2095_v53 = vmax.f32 %v1967_v46, %v2031_v49  ;;  %v3147_v49 = vld [vmem:[%s4084_s0 + $0x258] sm:$0xff] }
  0x96   :  { %v2163_v54 = vadd.f32 %v3388_v50, %v2095_v53 }
  0x98   :  { %v2227_v55 = vmax.f32 %v2163_v54, 0.0 }
  0x99   :  { %v1649_v56 = vpop.f32.mrf.mxu2  ;;  %v1809_v57 = vpop.f32.mrf.mxu3 }
  0x9a   :  { %v2291_v60 = vpack.c.bf16 %v2227_v55, %v2227_v55  ;;  %v2032_v62 = vmax.f32 %v1649_v56, %v1809_v57  ;;  %v1332_v63 = vpop.f32.mrf.mxu0  ;;  %v1492_v0 = vpop.f32.mrf.mxu1 }
  0x9b   :  { %v1969_v6 = vmax.f32 %v1332_v63, %v1492_v0 }
  0x9c   :  { %2356 = vst.msk [vmem:[%s4086_s3] sm:$0xf] %vm2355_vm3, %v2291_v60  ;;  %v2096_v3 = vmax.f32 %v1968_v61, %v2032_v62 }
  0x9d   :  { %2953 = vmatmul.msk.bf16.gmra.mxu0 %vm926_vm2, %v3081_v58  ;;  %2985 = vmatmul.msk.bf16.gmra.mxu1 %vm926_vm2, %v3113_v59 }
  0x9e   :  { %v2164_v4 = vadd.f32 %v3388_v50, %v2096_v3  ;;  %3017 = vmatmul.msk.bf16.gmra.mxu2 %vm926_vm2, %v3145_v1  ;;  %3049 = vmatmul.msk.bf16.gmra.mxu3 %vm926_vm2, %v3177_v2  ;;  %v3084_v3 = vld [vmem:[%s4084_s0 + $0x60] sm:$0xff] }
  0xa0   :  { %v2228_v5 = vmax.f32 %v2164_v4, 0.0  ;;  %v3116_v4 = vld [vmem:[%s4084_s0 + $0x160] sm:$0xff] }
  0xa1   :  { %v1652_v7 = vpop.f32.mrf.mxu2  ;;  %v1812_v8 = vpop.f32.mrf.mxu3 }
  0xa2   :  { %v2292_v9 = vpack.c.bf16 %v2228_v5, %v2228_v5  ;;  %v2033_v10 = vmax.f32 %v1652_v7, %v1812_v8  ;;  %v1334_v11 = vpop.f32.mrf.mxu0  ;;  %v1494_v12 = vpop.f32.mrf.mxu1 }
  0xa3   :  { %v1970_v21 = vmax.f32 %v1334_v11, %v1494_v12  ;;  %v3180_v11 = vld [vmem:[%s4084_s0 + $0x360] sm:$0xff] }
  0xa4   :  { %2357 = vst.msk [vmem:[%s4086_s3 + $0x4] sm:$0xf] %vm2355_vm3, %v2292_v9  ;;  %v2097_v13 = vmax.f32 %v1969_v6, %v2033_v10  ;;  %v3148_v10 = vld [vmem:[%s4084_s0 + $0x260] sm:$0xff] }
  0xa6   :  { %v2165_v14 = vadd.f32 %v3388_v50, %v2097_v13 }
  0xa8   :  { %v2229_v15 = vmax.f32 %v2165_v14, 0.0 }
  0xa9   :  { %v1654_v16 = vpop.f32.mrf.mxu2  ;;  %v1814_v17 = vpop.f32.mrf.mxu3 }
  0xaa   :  { %v2293_v20 = vpack.c.bf16 %v2229_v15, %v2229_v15  ;;  %v2034_v22 = vmax.f32 %v1654_v16, %v1814_v17  ;;  %v1337_v23 = vpop.f32.mrf.mxu0  ;;  %v1497_v24 = vpop.f32.mrf.mxu1 }
  0xab   :  { %v1971_v30 = vmax.f32 %v1337_v23, %v1497_v24 }
  0xac   :  { %2358 = vst.msk [vmem:[%s4086_s3 + $0x8] sm:$0xf] %vm2355_vm3, %v2293_v20  ;;  %v2098_v27 = vmax.f32 %v1970_v21, %v2034_v22 }
  0xad   :  { %2954 = vmatmul.msk.bf16.gmra.mxu0 %vm926_vm2, %v3082_v18  ;;  %2986 = vmatmul.msk.bf16.gmra.mxu1 %vm926_vm2, %v3114_v19 }
  0xae   :  { %v2166_v28 = vadd.f32 %v3388_v50, %v2098_v27  ;;  %3018 = vmatmul.msk.bf16.gmra.mxu2 %vm926_vm2, %v3146_v25  ;;  %3050 = vmatmul.msk.bf16.gmra.mxu3 %vm926_vm2, %v3178_v26  ;;  %v3085_v27 = vld [vmem:[%s4084_s0 + $0x68] sm:$0xff] }
  0xb0   :  { %v2230_v29 = vmax.f32 %v2166_v28, 0.0  ;;  %v3117_v28 = vld [vmem:[%s4084_s0 + $0x168] sm:$0xff] }
  0xb1   :  { %v1657_v31 = vpop.f32.mrf.mxu2  ;;  %v1817_v32 = vpop.f32.mrf.mxu3 }
  0xb2   :  { %v2294_v33 = vpack.c.bf16 %v2230_v29, %v2230_v29  ;;  %v2035_v34 = vmax.f32 %v1657_v31, %v1817_v32  ;;  %v1339_v35 = vpop.f32.mrf.mxu0  ;;  %v1499_v36 = vpop.f32.mrf.mxu1 }
  0xb3   :  { %v1972_v45 = vmax.f32 %v1339_v35, %v1499_v36  ;;  %v3181_v35 = vld [vmem:[%s4084_s0 + $0x368] sm:$0xff] }
  0xb4   :  { %2359 = vst.msk [vmem:[%s4086_s3 + $0xc] sm:$0xf] %vm2355_vm3, %v2294_v33  ;;  %v2099_v37 = vmax.f32 %v1971_v30, %v2035_v34  ;;  %v3149_v34 = vld [vmem:[%s4084_s0 + $0x268] sm:$0xff] }
  0xb6   :  { %v2167_v38 = vadd.f32 %v3388_v50, %v2099_v37 }
  0xb8   :  { %v2231_v39 = vmax.f32 %v2167_v38, 0.0 }
  0xb9   :  { %v1659_v40 = vpop.f32.mrf.mxu2  ;;  %v1819_v41 = vpop.f32.mrf.mxu3 }
  0xba   :  { %v2295_v44 = vpack.c.bf16 %v2231_v39, %v2231_v39  ;;  %v2036_v46 = vmax.f32 %v1659_v40, %v1819_v41  ;;  %v1342_v47 = vpop.f32.mrf.mxu0  ;;  %v1502_v48 = vpop.f32.mrf.mxu1 }
  0xbb   :  { %v1973_v55 = vmax.f32 %v1342_v47, %v1502_v48 }
  0xbc   :  { %2360 = vst.msk [vmem:[%s4086_s3 + $0x10] sm:$0xf] %vm2355_vm3, %v2295_v44  ;;  %v2100_v52 = vmax.f32 %v1972_v45, %v2036_v46 }
  0xbd   :  { %2955 = vmatmul.msk.bf16.gmra.mxu0 %vm926_vm2, %v3083_v42  ;;  %2987 = vmatmul.msk.bf16.gmra.mxu1 %vm926_vm2, %v3115_v43 }
  0xbe   :  { %v2168_v53 = vadd.f32 %v3388_v50, %v2100_v52  ;;  %3019 = vmatmul.msk.bf16.gmra.mxu2 %vm926_vm2, %v3147_v49  ;;  %3051 = vmatmul.msk.bf16.gmra.mxu3 %vm926_vm2, %v3179_v51  ;;  %v3086_v52 = vld [vmem:[%s4084_s0 + $0x70] sm:$0xff] }
  0xc0   :  { %v2232_v54 = vmax.f32 %v2168_v53, 0.0  ;;  %v3118_v53 = vld [vmem:[%s4084_s0 + $0x170] sm:$0xff] }
  0xc1   :  { %v1662_v56 = vpop.f32.mrf.mxu2  ;;  %v1822_v57 = vpop.f32.mrf.mxu3 }
  0xc2   :  { %v2296_v58 = vpack.c.bf16 %v2232_v54, %v2232_v54  ;;  %v2037_v59 = vmax.f32 %v1662_v56, %v1822_v57  ;;  %v1344_v60 = vpop.f32.mrf.mxu0  ;;  %v1504_v61 = vpop.f32.mrf.mxu1 }
  0xc3   :  { %v1974_v6 = vmax.f32 %v1344_v60, %v1504_v61  ;;  %v3182_v60 = vld [vmem:[%s4084_s0 + $0x370] sm:$0xff] }
  0xc4   :  { %2361 = vst.msk [vmem:[%s4086_s3 + $0x14] sm:$0xf] %vm2355_vm3, %v2296_v58  ;;  %v2101_v62 = vmax.f32 %v1973_v55, %v2037_v59  ;;  %v3150_v59 = vld [vmem:[%s4084_s0 + $0x270] sm:$0xff] }
  0xc6   :  { %v2169_v63 = vadd.f32 %v3388_v50, %v2101_v62 }
  0xc8   :  { %v2233_v0 = vmax.f32 %v2169_v63, 0.0 }
  0xc9   :  { %v1664_v1 = vpop.f32.mrf.mxu2  ;;  %v1824_v2 = vpop.f32.mrf.mxu3 }
  0xca   :  { %v2297_v5 = vpack.c.bf16 %v2233_v0, %v2233_v0  ;;  %v2038_v7 = vmax.f32 %v1664_v1, %v1824_v2  ;;  %v1347_v8 = vpop.f32.mrf.mxu0  ;;  %v1507_v9 = vpop.f32.mrf.mxu1 }
  0xcb   :  { %v1975_v15 = vmax.f32 %v1347_v8, %v1507_v9 }
  0xcc   :  { %2362 = vst.msk [vmem:[%s4086_s3 + $0x18] sm:$0xf] %vm2355_vm3, %v2297_v5  ;;  %v2102_v12 = vmax.f32 %v1974_v6, %v2038_v7 }
  0xcd   :  { %2956 = vmatmul.msk.bf16.gmra.mxu0 %vm926_vm2, %v3084_v3  ;;  %2988 = vmatmul.msk.bf16.gmra.mxu1 %vm926_vm2, %v3116_v4 }
  0xce   :  { %v2170_v13 = vadd.f32 %v3388_v50, %v2102_v12  ;;  %3020 = vmatmul.msk.bf16.gmra.mxu2 %vm926_vm2, %v3148_v10  ;;  %3052 = vmatmul.msk.bf16.gmra.mxu3 %vm926_vm2, %v3180_v11  ;;  %v3087_v12 = vld [vmem:[%s4084_s0 + $0x78] sm:$0xff] }
  0xd0   :  { %v2234_v14 = vmax.f32 %v2170_v13, 0.0  ;;  %v3119_v13 = vld [vmem:[%s4084_s0 + $0x178] sm:$0xff] }
  0xd1   :  { %v1667_v16 = vpop.f32.mrf.mxu2  ;;  %v1827_v17 = vpop.f32.mrf.mxu3 }
  0xd2   :  { %v2298_v18 = vpack.c.bf16 %v2234_v14, %v2234_v14  ;;  %v2039_v19 = vmax.f32 %v1667_v16, %v1827_v17  ;;  %v1349_v20 = vpop.f32.mrf.mxu0  ;;  %v1509_v21 = vpop.f32.mrf.mxu1 }
  0xd3   :  { %v1976_v30 = vmax.f32 %v1349_v20, %v1509_v21  ;;  %v3183_v20 = vld [vmem:[%s4084_s0 + $0x378] sm:$0xff] }
  0xd4   :  { %2363 = vst.msk [vmem:[%s4086_s3 + $0x1c] sm:$0xf] %vm2355_vm3, %v2298_v18  ;;  %v2103_v22 = vmax.f32 %v1975_v15, %v2039_v19  ;;  %v3151_v19 = vld [vmem:[%s4084_s0 + $0x278] sm:$0xff] }
  0xd6   :  { %v2171_v23 = vadd.f32 %v3388_v50, %v2103_v22 }
  0xd8   :  { %v2235_v24 = vmax.f32 %v2171_v23, 0.0 }
  0xd9   :  { %v1669_v25 = vpop.f32.mrf.mxu2  ;;  %v1829_v26 = vpop.f32.mrf.mxu3 }
  0xda   :  { %v2299_v29 = vpack.c.bf16 %v2235_v24, %v2235_v24  ;;  %v2040_v31 = vmax.f32 %v1669_v25, %v1829_v26  ;;  %v1352_v32 = vpop.f32.mrf.mxu0  ;;  %v1512_v33 = vpop.f32.mrf.mxu1 }
  0xdb   :  { %v1977_v39 = vmax.f32 %v1352_v32, %v1512_v33 }
  0xdc   :  { %2364 = vst.msk [vmem:[%s4086_s3 + $0x20] sm:$0xf] %vm2355_vm3, %v2299_v29  ;;  %v2104_v36 = vmax.f32 %v1976_v30, %v2040_v31 }
  0xdd   :  { %2957 = vmatmul.msk.bf16.gmra.mxu0 %vm926_vm2, %v3085_v27  ;;  %2989 = vmatmul.msk.bf16.gmra.mxu1 %vm926_vm2, %v3117_v28 }
  0xde   :  { %v2172_v37 = vadd.f32 %v3388_v50, %v2104_v36  ;;  %3021 = vmatmul.msk.bf16.gmra.mxu2 %vm926_vm2, %v3149_v34  ;;  %3053 = vmatmul.msk.bf16.gmra.mxu3 %vm926_vm2, %v3181_v35  ;;  %v3088_v36 = vld [vmem:[%s4084_s0 + $0x80] sm:$0xff] }
  0xe0   :  { %v2236_v38 = vmax.f32 %v2172_v37, 0.0  ;;  %v3120_v37 = vld [vmem:[%s4084_s0 + $0x180] sm:$0xff] }
  0xe1   :  { %v1672_v40 = vpop.f32.mrf.mxu2  ;;  %v1832_v41 = vpop.f32.mrf.mxu3 }
  0xe2   :  { %v2300_v42 = vpack.c.bf16 %v2236_v38, %v2236_v38  ;;  %v2041_v43 = vmax.f32 %v1672_v40, %v1832_v41  ;;  %v1354_v44 = vpop.f32.mrf.mxu0  ;;  %v1514_v45 = vpop.f32.mrf.mxu1 }
  0xe3   :  { %v1978_v55 = vmax.f32 %v1354_v44, %v1514_v45  ;;  %v3184_v44 = vld [vmem:[%s4084_s0 + $0x380] sm:$0xff] }
  0xe4   :  { %2365 = vst.msk [vmem:[%s4086_s3 + $0x24] sm:$0xf] %vm2355_vm3, %v2300_v42  ;;  %v2105_v46 = vmax.f32 %v1977_v39, %v2041_v43  ;;  %v3152_v43 = vld [vmem:[%s4084_s0 + $0x280] sm:$0xff] }
  0xe6   :  { %v2173_v47 = vadd.f32 %v3388_v50, %v2105_v46 }
  0xe8   :  { %v2237_v48 = vmax.f32 %v2173_v47, 0.0 }
  0xe9   :  { %v1674_v49 = vpop.f32.mrf.mxu2  ;;  %v1834_v51 = vpop.f32.mrf.mxu3 }
  0xea   :  { %v2301_v54 = vpack.c.bf16 %v2237_v48, %v2237_v48  ;;  %v2042_v56 = vmax.f32 %v1674_v49, %v1834_v51  ;;  %v1357_v57 = vpop.f32.mrf.mxu0  ;;  %v1517_v58 = vpop.f32.mrf.mxu1 }
  0xeb   :  { %v1979_v0 = vmax.f32 %v1357_v57, %v1517_v58 }
  0xec   :  { %2366 = vst.msk [vmem:[%s4086_s3 + $0x28] sm:$0xf] %vm2355_vm3, %v2301_v54  ;;  %v2106_v61 = vmax.f32 %v1978_v55, %v2042_v56 }
  0xed   :  { %2958 = vmatmul.msk.bf16.gmra.mxu0 %vm926_vm2, %v3086_v52  ;;  %2990 = vmatmul.msk.bf16.gmra.mxu1 %vm926_vm2, %v3118_v53 }
  0xee   :  { %v2174_v62 = vadd.f32 %v3388_v50, %v2106_v61  ;;  %3022 = vmatmul.msk.bf16.gmra.mxu2 %vm926_vm2, %v3150_v59  ;;  %3054 = vmatmul.msk.bf16.gmra.mxu3 %vm926_vm2, %v3182_v60  ;;  %v3089_v61 = vld [vmem:[%s4084_s0 + $0x88] sm:$0xff] }
  0xf0   :  { %v2238_v63 = vmax.f32 %v2174_v62, 0.0  ;;  %v3121_v62 = vld [vmem:[%s4084_s0 + $0x188] sm:$0xff] }
  0xf1   :  { %v1677_v1 = vpop.f32.mrf.mxu2  ;;  %v1837_v2 = vpop.f32.mrf.mxu3 }
  0xf2   :  { %v2302_v3 = vpack.c.bf16 %v2238_v63, %v2238_v63  ;;  %v2043_v4 = vmax.f32 %v1677_v1, %v1837_v2  ;;  %v1359_v5 = vpop.f32.mrf.mxu0  ;;  %v1519_v6 = vpop.f32.mrf.mxu1 }
  0xf3   :  { %v1980_v15 = vmax.f32 %v1359_v5, %v1519_v6  ;;  %v3185_v5 = vld [vmem:[%s4084_s0 + $0x388] sm:$0xff] }
  0xf4   :  { %2367 = vst.msk [vmem:[%s4086_s3 + $0x2c] sm:$0xf] %vm2355_vm3, %v2302_v3  ;;  %v2107_v7 = vmax.f32 %v1979_v0, %v2043_v4  ;;  %v3153_v4 = vld [vmem:[%s4084_s0 + $0x288] sm:$0xff] }
  0xf6   :  { %v2175_v8 = vadd.f32 %v3388_v50, %v2107_v7 }
  0xf8   :  { %v2239_v9 = vmax.f32 %v2175_v8, 0.0 }
  0xf9   :  { %v1679_v10 = vpop.f32.mrf.mxu2  ;;  %v1839_v11 = vpop.f32.mrf.mxu3 }
  0xfa   :  { %v2303_v14 = vpack.c.bf16 %v2239_v9, %v2239_v9  ;;  %v2044_v16 = vmax.f32 %v1679_v10, %v1839_v11  ;;  %v1362_v17 = vpop.f32.mrf.mxu0  ;;  %v1522_v18 = vpop.f32.mrf.mxu1 }
  0xfb   :  { %v1981_v24 = vmax.f32 %v1362_v17, %v1522_v18 }
  0xfc   :  { %2368 = vst.msk [vmem:[%s4086_s3 + $0x30] sm:$0xf] %vm2355_vm3, %v2303_v14  ;;  %v2108_v21 = vmax.f32 %v1980_v15, %v2044_v16 }
  0xfd   :  { %2959 = vmatmul.msk.bf16.gmra.mxu0 %vm926_vm2, %v3087_v12  ;;  %2991 = vmatmul.msk.bf16.gmra.mxu1 %vm926_vm2, %v3119_v13 }
  0xfe   :  { %v2176_v22 = vadd.f32 %v3388_v50, %v2108_v21  ;;  %3023 = vmatmul.msk.bf16.gmra.mxu2 %vm926_vm2, %v3151_v19  ;;  %3055 = vmatmul.msk.bf16.gmra.mxu3 %vm926_vm2, %v3183_v20  ;;  %v3090_v21 = vld [vmem:[%s4084_s0 + $0x90] sm:$0xff] }
 0x100   :  { %v2240_v23 = vmax.f32 %v2176_v22, 0.0  ;;  %v3122_v22 = vld [vmem:[%s4084_s0 + $0x190] sm:$0xff] }
 0x101   :  { %v1682_v25 = vpop.f32.mrf.mxu2  ;;  %v1842_v26 = vpop.f32.mrf.mxu3 }
 0x102   :  { %v2304_v27 = vpack.c.bf16 %v2240_v23, %v2240_v23  ;;  %v2045_v28 = vmax.f32 %v1682_v25, %v1842_v26  ;;  %v1364_v29 = vpop.f32.mrf.mxu0  ;;  %v1524_v30 = vpop.f32.mrf.mxu1 }
 0x103   :  { %v1982_v39 = vmax.f32 %v1364_v29, %v1524_v30  ;;  %v3186_v29 = vld [vmem:[%s4084_s0 + $0x390] sm:$0xff] }
 0x104   :  { %2369 = vst.msk [vmem:[%s4086_s3 + $0x34] sm:$0xf] %vm2355_vm3, %v2304_v27  ;;  %v2109_v31 = vmax.f32 %v1981_v24, %v2045_v28  ;;  %v3154_v28 = vld [vmem:[%s4084_s0 + $0x290] sm:$0xff] }
 0x106   :  { %v2177_v32 = vadd.f32 %v3388_v50, %v2109_v31 }
 0x108   :  { %v2241_v33 = vmax.f32 %v2177_v32, 0.0 }
 0x109   :  { %v1684_v34 = vpop.f32.mrf.mxu2  ;;  %v1844_v35 = vpop.f32.mrf.mxu3 }
 0x10a   :  { %v2305_v38 = vpack.c.bf16 %v2241_v33, %v2241_v33  ;;  %v2046_v40 = vmax.f32 %v1684_v34, %v1844_v35  ;;  %v1367_v41 = vpop.f32.mrf.mxu0  ;;  %v1527_v42 = vpop.f32.mrf.mxu1 }
 0x10b   :  { %v1983_v48 = vmax.f32 %v1367_v41, %v1527_v42 }
 0x10c   :  { %2370 = vst.msk [vmem:[%s4086_s3 + $0x38] sm:$0xf] %vm2355_vm3, %v2305_v38  ;;  %v2110_v45 = vmax.f32 %v1982_v39, %v2046_v40 }
 0x10d   :  { %2960 = vmatmul.msk.bf16.gmra.mxu0 %vm926_vm2, %v3088_v36  ;;  %2992 = vmatmul.msk.bf16.gmra.mxu1 %vm926_vm2, %v3120_v37 }
 0x10e   :  { %v2178_v46 = vadd.f32 %v3388_v50, %v2110_v45  ;;  %3024 = vmatmul.msk.bf16.gmra.mxu2 %vm926_vm2, %v3152_v43  ;;  %3056 = vmatmul.msk.bf16.gmra.mxu3 %vm926_vm2, %v3184_v44  ;;  %v3091_v45 = vld [vmem:[%s4084_s0 + $0x98] sm:$0xff] }
 0x110   :  { %v2242_v47 = vmax.f32 %v2178_v46, 0.0  ;;  %v3123_v46 = vld [vmem:[%s4084_s0 + $0x198] sm:$0xff] }
 0x111   :  { %v1687_v49 = vpop.f32.mrf.mxu2  ;;  %v1847_v51 = vpop.f32.mrf.mxu3 }
 0x112   :  { %v2306_v52 = vpack.c.bf16 %v2242_v47, %v2242_v47  ;;  %v2047_v53 = vmax.f32 %v1687_v49, %v1847_v51  ;;  %v1369_v54 = vpop.f32.mrf.mxu0  ;;  %v1529_v55 = vpop.f32.mrf.mxu1 }
 0x113   :  { %v1984_v0 = vmax.f32 %v1369_v54, %v1529_v55  ;;  %v3187_v54 = vld [vmem:[%s4084_s0 + $0x398] sm:$0xff] }
 0x114   :  { %2371 = vst.msk [vmem:[%s4086_s3 + $0x3c] sm:$0xf] %vm2355_vm3, %v2306_v52  ;;  %v2111_v56 = vmax.f32 %v1983_v48, %v2047_v53  ;;  %v3155_v53 = vld [vmem:[%s4084_s0 + $0x298] sm:$0xff] }
 0x116   :  { %v2179_v57 = vadd.f32 %v3388_v50, %v2111_v56 }
 0x118   :  { %v2243_v58 = vmax.f32 %v2179_v57, 0.0 }
 0x119   :  { %v1689_v59 = vpop.f32.mrf.mxu2  ;;  %v1849_v60 = vpop.f32.mrf.mxu3 }
 0x11a   :  { %v2307_v63 = vpack.c.bf16 %v2243_v58, %v2243_v58  ;;  %v2048_v1 = vmax.f32 %v1689_v59, %v1849_v60  ;;  %v1372_v2 = vpop.f32.mrf.mxu0  ;;  %v1532_v3 = vpop.f32.mrf.mxu1 }
 0x11b   :  { %v1985_v9 = vmax.f32 %v1372_v2, %v1532_v3 }
 0x11c   :  { %2372 = vst.msk [vmem:[%s4086_s3 + $0x40] sm:$0xf] %vm2355_vm3, %v2307_v63  ;;  %v2112_v6 = vmax.f32 %v1984_v0, %v2048_v1 }
 0x11d   :  { %2961 = vmatmul.msk.bf16.gmra.mxu0 %vm926_vm2, %v3089_v61  ;;  %2993 = vmatmul.msk.bf16.gmra.mxu1 %vm926_vm2, %v3121_v62 }
 0x11e   :  { %v2180_v7 = vadd.f32 %v3388_v50, %v2112_v6  ;;  %3025 = vmatmul.msk.bf16.gmra.mxu2 %vm926_vm2, %v3153_v4  ;;  %3057 = vmatmul.msk.bf16.gmra.mxu3 %vm926_vm2, %v3185_v5  ;;  %v3092_v6 = vld [vmem:[%s4084_s0 + $0xa0] sm:$0xff] }
 0x120   :  { %v2244_v8 = vmax.f32 %v2180_v7, 0.0  ;;  %v3124_v7 = vld [vmem:[%s4084_s0 + $0x1a0] sm:$0xff] }
 0x121   :  { %v1692_v10 = vpop.f32.mrf.mxu2  ;;  %v1852_v11 = vpop.f32.mrf.mxu3 }
 0x122   :  { %v2308_v12 = vpack.c.bf16 %v2244_v8, %v2244_v8  ;;  %v2049_v13 = vmax.f32 %v1692_v10, %v1852_v11  ;;  %v1374_v14 = vpop.f32.mrf.mxu0  ;;  %v1534_v15 = vpop.f32.mrf.mxu1 }
 0x123   :  { %v1986_v24 = vmax.f32 %v1374_v14, %v1534_v15  ;;  %v3188_v14 = vld [vmem:[%s4084_s0 + $0x3a0] sm:$0xff] }
 0x124   :  { %2373 = vst.msk [vmem:[%s4086_s3 + $0x44] sm:$0xf] %vm2355_vm3, %v2308_v12  ;;  %v2113_v16 = vmax.f32 %v1985_v9, %v2049_v13  ;;  %v3156_v13 = vld [vmem:[%s4084_s0 + $0x2a0] sm:$0xff] }
 0x126   :  { %v2181_v17 = vadd.f32 %v3388_v50, %v2113_v16 }
 0x128   :  { %v2245_v18 = vmax.f32 %v2181_v17, 0.0 }
 0x129   :  { %v1694_v19 = vpop.f32.mrf.mxu2  ;;  %v1854_v20 = vpop.f32.mrf.mxu3 }
 0x12a   :  { %v2309_v23 = vpack.c.bf16 %v2245_v18, %v2245_v18  ;;  %v2050_v25 = vmax.f32 %v1694_v19, %v1854_v20  ;;  %v1377_v26 = vpop.f32.mrf.mxu0  ;;  %v1537_v27 = vpop.f32.mrf.mxu1 }
 0x12b   :  { %v1987_v33 = vmax.f32 %v1377_v26, %v1537_v27 }
 0x12c   :  { %2374 = vst.msk [vmem:[%s4086_s3 + $0x48] sm:$0xf] %vm2355_vm3, %v2309_v23  ;;  %v2114_v30 = vmax.f32 %v1986_v24, %v2050_v25 }
 0x12d   :  { %2962 = vmatmul.msk.bf16.gmra.mxu0 %vm926_vm2, %v3090_v21  ;;  %2994 = vmatmul.msk.bf16.gmra.mxu1 %vm926_vm2, %v3122_v22 }
 0x12e   :  { %v2182_v31 = vadd.f32 %v3388_v50, %v2114_v30  ;;  %3026 = vmatmul.msk.bf16.gmra.mxu2 %vm926_vm2, %v3154_v28  ;;  %3058 = vmatmul.msk.bf16.gmra.mxu3 %vm926_vm2, %v3186_v29  ;;  %v3093_v30 = vld [vmem:[%s4084_s0 + $0xa8] sm:$0xff] }
 0x130   :  { %v2246_v32 = vmax.f32 %v2182_v31, 0.0  ;;  %v3125_v31 = vld [vmem:[%s4084_s0 + $0x1a8] sm:$0xff] }
 0x131   :  { %v1697_v34 = vpop.f32.mrf.mxu2  ;;  %v1857_v35 = vpop.f32.mrf.mxu3 }
 0x132   :  { %v2310_v36 = vpack.c.bf16 %v2246_v32, %v2246_v32  ;;  %v2051_v37 = vmax.f32 %v1697_v34, %v1857_v35  ;;  %v1379_v38 = vpop.f32.mrf.mxu0  ;;  %v1539_v39 = vpop.f32.mrf.mxu1 }
 0x133   :  { %v1988_v48 = vmax.f32 %v1379_v38, %v1539_v39  ;;  %v3189_v38 = vld [vmem:[%s4084_s0 + $0x3a8] sm:$0xff] }
 0x134   :  { %2375 = vst.msk [vmem:[%s4086_s3 + $0x4c] sm:$0xf] %vm2355_vm3, %v2310_v36  ;;  %v2115_v40 = vmax.f32 %v1987_v33, %v2051_v37  ;;  %v3157_v37 = vld [vmem:[%s4084_s0 + $0x2a8] sm:$0xff] }
 0x136   :  { %v2183_v41 = vadd.f32 %v3388_v50, %v2115_v40 }
 0x138   :  { %v2247_v42 = vmax.f32 %v2183_v41, 0.0 }
 0x139   :  { %v1699_v43 = vpop.f32.mrf.mxu2  ;;  %v1859_v44 = vpop.f32.mrf.mxu3 }
 0x13a   :  { %v2311_v47 = vpack.c.bf16 %v2247_v42, %v2247_v42  ;;  %v2052_v49 = vmax.f32 %v1699_v43, %v1859_v44  ;;  %v1382_v51 = vpop.f32.mrf.mxu0  ;;  %v1542_v52 = vpop.f32.mrf.mxu1 }
 0x13b   :  { %v1989_v58 = vmax.f32 %v1382_v51, %v1542_v52 }
 0x13c   :  { %2376 = vst.msk [vmem:[%s4086_s3 + $0x50] sm:$0xf] %vm2355_vm3, %v2311_v47  ;;  %v2116_v55 = vmax.f32 %v1988_v48, %v2052_v49 }
 0x13d   :  { %2963 = vmatmul.msk.bf16.gmra.mxu0 %vm926_vm2, %v3091_v45  ;;  %2995 = vmatmul.msk.bf16.gmra.mxu1 %vm926_vm2, %v3123_v46 }
 0x13e   :  { %v2184_v56 = vadd.f32 %v3388_v50, %v2116_v55  ;;  %3027 = vmatmul.msk.bf16.gmra.mxu2 %vm926_vm2, %v3155_v53  ;;  %3059 = vmatmul.msk.bf16.gmra.mxu3 %vm926_vm2, %v3187_v54  ;;  %v3094_v55 = vld [vmem:[%s4084_s0 + $0xb0] sm:$0xff] }
 0x140   :  { %v2248_v57 = vmax.f32 %v2184_v56, 0.0  ;;  %v3126_v56 = vld [vmem:[%s4084_s0 + $0x1b0] sm:$0xff] }
 0x141   :  { %v1702_v59 = vpop.f32.mrf.mxu2  ;;  %v1862_v60 = vpop.f32.mrf.mxu3 }
 0x142   :  { %v2312_v61 = vpack.c.bf16 %v2248_v57, %v2248_v57  ;;  %v2053_v62 = vmax.f32 %v1702_v59, %v1862_v60  ;;  %v1384_v63 = vpop.f32.mrf.mxu0  ;;  %v1544_v0 = vpop.f32.mrf.mxu1 }
 0x143   :  { %v1990_v9 = vmax.f32 %v1384_v63, %v1544_v0  ;;  %v3190_v63 = vld [vmem:[%s4084_s0 + $0x3b0] sm:$0xff] }
 0x144   :  { %2377 = vst.msk [vmem:[%s4086_s3 + $0x54] sm:$0xf] %vm2355_vm3, %v2312_v61  ;;  %v2117_v1 = vmax.f32 %v1989_v58, %v2053_v62  ;;  %v3158_v62 = vld [vmem:[%s4084_s0 + $0x2b0] sm:$0xff] }
 0x146   :  { %v2185_v2 = vadd.f32 %v3388_v50, %v2117_v1 }
 0x148   :  { %v2249_v3 = vmax.f32 %v2185_v2, 0.0 }
 0x149   :  { %v1704_v4 = vpop.f32.mrf.mxu2  ;;  %v1864_v5 = vpop.f32.mrf.mxu3 }
 0x14a   :  { %v2313_v8 = vpack.c.bf16 %v2249_v3, %v2249_v3  ;;  %v2054_v10 = vmax.f32 %v1704_v4, %v1864_v5  ;;  %v1387_v11 = vpop.f32.mrf.mxu0  ;;  %v1547_v12 = vpop.f32.mrf.mxu1 }
 0x14b   :  { %v1991_v18 = vmax.f32 %v1387_v11, %v1547_v12 }
 0x14c   :  { %2378 = vst.msk [vmem:[%s4086_s3 + $0x58] sm:$0xf] %vm2355_vm3, %v2313_v8  ;;  %v2118_v15 = vmax.f32 %v1990_v9, %v2054_v10 }
 0x14d   :  { %2964 = vmatmul.msk.bf16.gmra.mxu0 %vm926_vm2, %v3092_v6  ;;  %2996 = vmatmul.msk.bf16.gmra.mxu1 %vm926_vm2, %v3124_v7 }
 0x14e   :  { %v2186_v16 = vadd.f32 %v3388_v50, %v2118_v15  ;;  %3028 = vmatmul.msk.bf16.gmra.mxu2 %vm926_vm2, %v3156_v13  ;;  %3060 = vmatmul.msk.bf16.gmra.mxu3 %vm926_vm2, %v3188_v14  ;;  %v3095_v15 = vld [vmem:[%s4084_s0 + $0xb8] sm:$0xff] }
 0x150   :  { %v2250_v17 = vmax.f32 %v2186_v16, 0.0  ;;  %v3127_v16 = vld [vmem:[%s4084_s0 + $0x1b8] sm:$0xff] }
 0x151   :  { %v1707_v19 = vpop.f32.mrf.mxu2  ;;  %v1867_v20 = vpop.f32.mrf.mxu3 }
 0x152   :  { %v2314_v21 = vpack.c.bf16 %v2250_v17, %v2250_v17  ;;  %v2055_v22 = vmax.f32 %v1707_v19, %v1867_v20  ;;  %v1389_v23 = vpop.f32.mrf.mxu0  ;;  %v1549_v24 = vpop.f32.mrf.mxu1 }
 0x153   :  { %v1992_v33 = vmax.f32 %v1389_v23, %v1549_v24  ;;  %v3191_v23 = vld [vmem:[%s4084_s0 + $0x3b8] sm:$0xff] }
 0x154   :  { %2379 = vst.msk [vmem:[%s4086_s3 + $0x5c] sm:$0xf] %vm2355_vm3, %v2314_v21  ;;  %v2119_v25 = vmax.f32 %v1991_v18, %v2055_v22  ;;  %v3159_v22 = vld [vmem:[%s4084_s0 + $0x2b8] sm:$0xff] }
 0x156   :  { %v2187_v26 = vadd.f32 %v3388_v50, %v2119_v25 }
 0x158   :  { %v2251_v27 = vmax.f32 %v2187_v26, 0.0 }
 0x159   :  { %v1709_v28 = vpop.f32.mrf.mxu2  ;;  %v1869_v29 = vpop.f32.mrf.mxu3 }
 0x15a   :  { %v2315_v32 = vpack.c.bf16 %v2251_v27, %v2251_v27  ;;  %v2056_v34 = vmax.f32 %v1709_v28, %v1869_v29  ;;  %v1392_v35 = vpop.f32.mrf.mxu0  ;;  %v1552_v36 = vpop.f32.mrf.mxu1 }
 0x15b   :  { %v1993_v42 = vmax.f32 %v1392_v35, %v1552_v36 }
 0x15c   :  { %2380 = vst.msk [vmem:[%s4086_s3 + $0x60] sm:$0xf] %vm2355_vm3, %v2315_v32  ;;  %v2120_v39 = vmax.f32 %v1992_v33, %v2056_v34 }
 0x15d   :  { %2965 = vmatmul.msk.bf16.gmra.mxu0 %vm926_vm2, %v3093_v30  ;;  %2997 = vmatmul.msk.bf16.gmra.mxu1 %vm926_vm2, %v3125_v31 }
 0x15e   :  { %v2188_v40 = vadd.f32 %v3388_v50, %v2120_v39  ;;  %3029 = vmatmul.msk.bf16.gmra.mxu2 %vm926_vm2, %v3157_v37  ;;  %3061 = vmatmul.msk.bf16.gmra.mxu3 %vm926_vm2, %v3189_v38  ;;  %v3096_v39 = vld [vmem:[%s4084_s0 + $0xc0] sm:$0xff] }
 0x160   :  { %v2252_v41 = vmax.f32 %v2188_v40, 0.0  ;;  %v3128_v40 = vld [vmem:[%s4084_s0 + $0x1c0] sm:$0xff] }
 0x161   :  { %v1712_v43 = vpop.f32.mrf.mxu2  ;;  %v1872_v44 = vpop.f32.mrf.mxu3 }
 0x162   :  { %v2316_v45 = vpack.c.bf16 %v2252_v41, %v2252_v41  ;;  %v2057_v46 = vmax.f32 %v1712_v43, %v1872_v44  ;;  %v1394_v47 = vpop.f32.mrf.mxu0  ;;  %v1554_v48 = vpop.f32.mrf.mxu1 }
 0x163   :  { %v1994_v58 = vmax.f32 %v1394_v47, %v1554_v48  ;;  %v3192_v47 = vld [vmem:[%s4084_s0 + $0x3c0] sm:$0xff] }
 0x164   :  { %2381 = vst.msk [vmem:[%s4086_s3 + $0x64] sm:$0xf] %vm2355_vm3, %v2316_v45  ;;  %v2121_v49 = vmax.f32 %v1993_v42, %v2057_v46  ;;  %v3160_v46 = vld [vmem:[%s4084_s0 + $0x2c0] sm:$0xff] }
 0x166   :  { %v2189_v51 = vadd.f32 %v3388_v50, %v2121_v49 }
 0x168   :  { %v2253_v52 = vmax.f32 %v2189_v51, 0.0 }
 0x169   :  { %v1714_v53 = vpop.f32.mrf.mxu2  ;;  %v1874_v54 = vpop.f32.mrf.mxu3 }
 0x16a   :  { %v2317_v57 = vpack.c.bf16 %v2253_v52, %v2253_v52  ;;  %v2058_v59 = vmax.f32 %v1714_v53, %v1874_v54  ;;  %v1397_v60 = vpop.f32.mrf.mxu0  ;;  %v1557_v61 = vpop.f32.mrf.mxu1 }
 0x16b   :  { %v1995_v3 = vmax.f32 %v1397_v60, %v1557_v61 }
 0x16c   :  { %2382 = vst.msk [vmem:[%s4086_s3 + $0x68] sm:$0xf] %vm2355_vm3, %v2317_v57  ;;  %v2122_v0 = vmax.f32 %v1994_v58, %v2058_v59 }
 0x16d   :  { %2966 = vmatmul.msk.bf16.gmra.mxu0 %vm926_vm2, %v3094_v55  ;;  %2998 = vmatmul.msk.bf16.gmra.mxu1 %vm926_vm2, %v3126_v56 }
 0x16e   :  { %v2190_v1 = vadd.f32 %v3388_v50, %v2122_v0  ;;  %3030 = vmatmul.msk.bf16.gmra.mxu2 %vm926_vm2, %v3158_v62  ;;  %3062 = vmatmul.msk.bf16.gmra.mxu3 %vm926_vm2, %v3190_v63  ;;  %v3097_v0 = vld [vmem:[%s4084_s0 + $0xc8] sm:$0xff] }
 0x170   :  { %v2254_v2 = vmax.f32 %v2190_v1, 0.0  ;;  %v3129_v1 = vld [vmem:[%s4084_s0 + $0x1c8] sm:$0xff] }
 0x171   :  { %v1717_v4 = vpop.f32.mrf.mxu2  ;;  %v1877_v5 = vpop.f32.mrf.mxu3 }
 0x172   :  { %v2318_v6 = vpack.c.bf16 %v2254_v2, %v2254_v2  ;;  %v2059_v7 = vmax.f32 %v1717_v4, %v1877_v5  ;;  %v1399_v8 = vpop.f32.mrf.mxu0  ;;  %v1559_v9 = vpop.f32.mrf.mxu1 }
 0x173   :  { %v1996_v18 = vmax.f32 %v1399_v8, %v1559_v9  ;;  %v3193_v8 = vld [vmem:[%s4084_s0 + $0x3c8] sm:$0xff] }
 0x174   :  { %2383 = vst.msk [vmem:[%s4086_s3 + $0x6c] sm:$0xf] %vm2355_vm3, %v2318_v6  ;;  %v2123_v10 = vmax.f32 %v1995_v3, %v2059_v7  ;;  %v3161_v7 = vld [vmem:[%s4084_s0 + $0x2c8] sm:$0xff] }
 0x176   :  { %v2191_v11 = vadd.f32 %v3388_v50, %v2123_v10 }
 0x178   :  { %v2255_v12 = vmax.f32 %v2191_v11, 0.0 }
 0x179   :  { %v1719_v13 = vpop.f32.mrf.mxu2  ;;  %v1879_v14 = vpop.f32.mrf.mxu3 }
 0x17a   :  { %v2319_v17 = vpack.c.bf16 %v2255_v12, %v2255_v12  ;;  %v2060_v19 = vmax.f32 %v1719_v13, %v1879_v14  ;;  %v1402_v20 = vpop.f32.mrf.mxu0  ;;  %v1562_v21 = vpop.f32.mrf.mxu1 }
 0x17b   :  { %v1997_v27 = vmax.f32 %v1402_v20, %v1562_v21 }
 0x17c   :  { %2384 = vst.msk [vmem:[%s4086_s3 + $0x70] sm:$0xf] %vm2355_vm3, %v2319_v17  ;;  %v2124_v24 = vmax.f32 %v1996_v18, %v2060_v19 }
 0x17d   :  { %2967 = vmatmul.msk.bf16.gmra.mxu0 %vm926_vm2, %v3095_v15  ;;  %2999 = vmatmul.msk.bf16.gmra.mxu1 %vm926_vm2, %v3127_v16 }
 0x17e   :  { %v2192_v25 = vadd.f32 %v3388_v50, %v2124_v24  ;;  %3031 = vmatmul.msk.bf16.gmra.mxu2 %vm926_vm2, %v3159_v22  ;;  %3063 = vmatmul.msk.bf16.gmra.mxu3 %vm926_vm2, %v3191_v23  ;;  %v3098_v24 = vld [vmem:[%s4084_s0 + $0xd0] sm:$0xff] }
 0x180   :  { %v2256_v26 = vmax.f32 %v2192_v25, 0.0  ;;  %v3130_v25 = vld [vmem:[%s4084_s0 + $0x1d0] sm:$0xff] }
 0x181   :  { %v1722_v28 = vpop.f32.mrf.mxu2  ;;  %v1882_v29 = vpop.f32.mrf.mxu3 }
 0x182   :  { %v2320_v30 = vpack.c.bf16 %v2256_v26, %v2256_v26  ;;  %v2061_v31 = vmax.f32 %v1722_v28, %v1882_v29  ;;  %v1404_v32 = vpop.f32.mrf.mxu0  ;;  %v1564_v33 = vpop.f32.mrf.mxu1 }
 0x183   :  { %v1998_v42 = vmax.f32 %v1404_v32, %v1564_v33  ;;  %v3194_v32 = vld [vmem:[%s4084_s0 + $0x3d0] sm:$0xff] }
 0x184   :  { %2385 = vst.msk [vmem:[%s4086_s3 + $0x74] sm:$0xf] %vm2355_vm3, %v2320_v30  ;;  %v2125_v34 = vmax.f32 %v1997_v27, %v2061_v31  ;;  %v3162_v31 = vld [vmem:[%s4084_s0 + $0x2d0] sm:$0xff] }
 0x186   :  { %v2193_v35 = vadd.f32 %v3388_v50, %v2125_v34 }
 0x188   :  { %v2257_v36 = vmax.f32 %v2193_v35, 0.0 }
 0x189   :  { %v1724_v37 = vpop.f32.mrf.mxu2  ;;  %v1884_v38 = vpop.f32.mrf.mxu3 }
 0x18a   :  { %v2321_v41 = vpack.c.bf16 %v2257_v36, %v2257_v36  ;;  %v2062_v43 = vmax.f32 %v1724_v37, %v1884_v38  ;;  %v1407_v44 = vpop.f32.mrf.mxu0  ;;  %v1567_v45 = vpop.f32.mrf.mxu1 }
 0x18b   :  { %v1999_v52 = vmax.f32 %v1407_v44, %v1567_v45 }
 0x18c   :  { %2386 = vst.msk [vmem:[%s4086_s3 + $0x78] sm:$0xf] %vm2355_vm3, %v2321_v41  ;;  %v2126_v48 = vmax.f32 %v1998_v42, %v2062_v43 }
 0x18d   :  { %2968 = vmatmul.msk.bf16.gmra.mxu0 %vm926_vm2, %v3096_v39  ;;  %3000 = vmatmul.msk.bf16.gmra.mxu1 %vm926_vm2, %v3128_v40 }
 0x18e   :  { %v2194_v49 = vadd.f32 %v3388_v50, %v2126_v48  ;;  %3032 = vmatmul.msk.bf16.gmra.mxu2 %vm926_vm2, %v3160_v46  ;;  %3064 = vmatmul.msk.bf16.gmra.mxu3 %vm926_vm2, %v3192_v47  ;;  %v3099_v48 = vld [vmem:[%s4084_s0 + $0xd8] sm:$0xff] }
 0x190   :  { %v2258_v51 = vmax.f32 %v2194_v49, 0.0  ;;  %v3131_v49 = vld [vmem:[%s4084_s0 + $0x1d8] sm:$0xff] }
 0x191   :  { %v1727_v53 = vpop.f32.mrf.mxu2  ;;  %v1887_v54 = vpop.f32.mrf.mxu3 }
 0x192   :  { %v2322_v55 = vpack.c.bf16 %v2258_v51, %v2258_v51  ;;  %v2063_v56 = vmax.f32 %v1727_v53, %v1887_v54  ;;  %v1409_v57 = vpop.f32.mrf.mxu0  ;;  %v1569_v58 = vpop.f32.mrf.mxu1 }
 0x193   :  { %v2000_v3 = vmax.f32 %v1409_v57, %v1569_v58  ;;  %v3195_v57 = vld [vmem:[%s4084_s0 + $0x3d8] sm:$0xff] }
 0x194   :  { %2387 = vst.msk [vmem:[%s4086_s3 + $0x7c] sm:$0xf] %vm2355_vm3, %v2322_v55  ;;  %v2127_v59 = vmax.f32 %v1999_v52, %v2063_v56  ;;  %v3163_v56 = vld [vmem:[%s4084_s0 + $0x2d8] sm:$0xff] }
 0x196   :  { %v2195_v60 = vadd.f32 %v3388_v50, %v2127_v59 }
 0x198   :  { %v2259_v61 = vmax.f32 %v2195_v60, 0.0 }
 0x199   :  { %v1729_v62 = vpop.f32.mrf.mxu2  ;;  %v1889_v63 = vpop.f32.mrf.mxu3 }
 0x19a   :  { %v2323_v2 = vpack.c.bf16 %v2259_v61, %v2259_v61  ;;  %v2064_v4 = vmax.f32 %v1729_v62, %v1889_v63  ;;  %v1412_v5 = vpop.f32.mrf.mxu0  ;;  %v1572_v6 = vpop.f32.mrf.mxu1 }
 0x19b   :  { %v2001_v12 = vmax.f32 %v1412_v5, %v1572_v6 }
 0x19c   :  { %2388 = vst.msk [vmem:[%s4086_s3 + $0x80] sm:$0xf] %vm2355_vm3, %v2323_v2  ;;  %v2128_v9 = vmax.f32 %v2000_v3, %v2064_v4 }
 0x19d   :  { %2969 = vmatmul.msk.bf16.gmra.mxu0 %vm926_vm2, %v3097_v0  ;;  %3001 = vmatmul.msk.bf16.gmra.mxu1 %vm926_vm2, %v3129_v1 }
 0x19e   :  { %v2196_v10 = vadd.f32 %v3388_v50, %v2128_v9  ;;  %3033 = vmatmul.msk.bf16.gmra.mxu2 %vm926_vm2, %v3161_v7  ;;  %3065 = vmatmul.msk.bf16.gmra.mxu3 %vm926_vm2, %v3193_v8  ;;  %v3835_v50 = vld [vmem:[%s4085_s2] ss:$0 sm:$0xff] }
 0x19f   :  { %v3100_v9 = vld [vmem:[%s4084_s0 + $0xe0] sm:$0xff] }
 0x1a0   :  { %v2260_v11 = vmax.f32 %v2196_v10, 0.0  ;;  %v3132_v10 = vld [vmem:[%s4084_s0 + $0x1e0] sm:$0xff] }
 0x1a1   :  { %v1732_v13 = vpop.f32.mrf.mxu2  ;;  %v1892_v14 = vpop.f32.mrf.mxu3 }
 0x1a2   :  { %v2324_v15 = vpack.c.bf16 %v2260_v11, %v2260_v11  ;;  %v2065_v16 = vmax.f32 %v1732_v13, %v1892_v14  ;;  %v1414_v17 = vpop.f32.mrf.mxu0  ;;  %v1574_v18 = vpop.f32.mrf.mxu1 }
 0x1a3   :  { %v2002_v27 = vmax.f32 %v1414_v17, %v1574_v18  ;;  %v3196_v17 = vld [vmem:[%s4084_s0 + $0x3e0] sm:$0xff] }
 0x1a4   :  { %2389 = vst.msk [vmem:[%s4086_s3 + $0x84] sm:$0xf] %vm2355_vm3, %v2324_v15  ;;  %v2129_v19 = vmax.f32 %v2001_v12, %v2065_v16  ;;  %v3164_v16 = vld [vmem:[%s4084_s0 + $0x2e0] sm:$0xff] }
 0x1a6   :  { %v2197_v20 = vadd.f32 %v3835_v50, %v2129_v19 }
 0x1a8   :  { %v2261_v21 = vmax.f32 %v2197_v20, 0.0 }
 0x1a9   :  { %v1734_v22 = vpop.f32.mrf.mxu2  ;;  %v1894_v23 = vpop.f32.mrf.mxu3 }
 0x1aa   :  { %v2325_v26 = vpack.c.bf16 %v2261_v21, %v2261_v21  ;;  %v2066_v28 = vmax.f32 %v1734_v22, %v1894_v23  ;;  %v1417_v29 = vpop.f32.mrf.mxu0  ;;  %v1577_v30 = vpop.f32.mrf.mxu1 }
 0x1ab   :  { %v2003_v36 = vmax.f32 %v1417_v29, %v1577_v30 }
 0x1ac   :  { %2390 = vst.msk [vmem:[%s4086_s3 + $0x88] sm:$0xf] %vm2355_vm3, %v2325_v26  ;;  %v2130_v33 = vmax.f32 %v2002_v27, %v2066_v28 }
 0x1ad   :  { %2970 = vmatmul.msk.bf16.gmra.mxu0 %vm926_vm2, %v3098_v24  ;;  %3002 = vmatmul.msk.bf16.gmra.mxu1 %vm926_vm2, %v3130_v25 }
 0x1ae   :  { %v2198_v34 = vadd.f32 %v3835_v50, %v2130_v33  ;;  %3034 = vmatmul.msk.bf16.gmra.mxu2 %vm926_vm2, %v3162_v31  ;;  %3066 = vmatmul.msk.bf16.gmra.mxu3 %vm926_vm2, %v3194_v32  ;;  %v3101_v33 = vld [vmem:[%s4084_s0 + $0xe8] sm:$0xff] }
 0x1b0   :  { %v2262_v35 = vmax.f32 %v2198_v34, 0.0  ;;  %v3133_v34 = vld [vmem:[%s4084_s0 + $0x1e8] sm:$0xff] }
 0x1b1   :  { %v1737_v37 = vpop.f32.mrf.mxu2  ;;  %v1897_v38 = vpop.f32.mrf.mxu3 }
 0x1b2   :  { %v2326_v39 = vpack.c.bf16 %v2262_v35, %v2262_v35  ;;  %v2067_v40 = vmax.f32 %v1737_v37, %v1897_v38  ;;  %v1419_v41 = vpop.f32.mrf.mxu0  ;;  %v1579_v42 = vpop.f32.mrf.mxu1 }
 0x1b3   :  { %v2004_v52 = vmax.f32 %v1419_v41, %v1579_v42  ;;  %v3197_v41 = vld [vmem:[%s4084_s0 + $0x3e8] sm:$0xff] }
 0x1b4   :  { %2391 = vst.msk [vmem:[%s4086_s3 + $0x8c] sm:$0xf] %vm2355_vm3, %v2326_v39  ;;  %v2131_v43 = vmax.f32 %v2003_v36, %v2067_v40  ;;  %v3165_v40 = vld [vmem:[%s4084_s0 + $0x2e8] sm:$0xff] }
 0x1b6   :  { %v2199_v44 = vadd.f32 %v3835_v50, %v2131_v43 }
 0x1b8   :  { %v2263_v45 = vmax.f32 %v2199_v44, 0.0 }
 0x1b9   :  { %v1739_v46 = vpop.f32.mrf.mxu2  ;;  %v1899_v47 = vpop.f32.mrf.mxu3 }
 0x1ba   :  { %v2327_v51 = vpack.c.bf16 %v2263_v45, %v2263_v45  ;;  %v2068_v53 = vmax.f32 %v1739_v46, %v1899_v47  ;;  %v1422_v54 = vpop.f32.mrf.mxu0  ;;  %v1582_v55 = vpop.f32.mrf.mxu1 }
 0x1bb   :  { %v2005_v61 = vmax.f32 %v1422_v54, %v1582_v55 }
 0x1bc   :  { %2392 = vst.msk [vmem:[%s4086_s3 + $0x90] sm:$0xf] %vm2355_vm3, %v2327_v51  ;;  %v2132_v58 = vmax.f32 %v2004_v52, %v2068_v53 }
 0x1bd   :  { %2971 = vmatmul.msk.bf16.gmra.mxu0 %vm926_vm2, %v3099_v48  ;;  %3003 = vmatmul.msk.bf16.gmra.mxu1 %vm926_vm2, %v3131_v49 }
 0x1be   :  { %v2200_v59 = vadd.f32 %v3835_v50, %v2132_v58  ;;  %3035 = vmatmul.msk.bf16.gmra.mxu2 %vm926_vm2, %v3163_v56  ;;  %3067 = vmatmul.msk.bf16.gmra.mxu3 %vm926_vm2, %v3195_v57  ;;  %v3102_v58 = vld [vmem:[%s4084_s0 + $0xf0] sm:$0xff] }
 0x1c0   :  { %v2264_v60 = vmax.f32 %v2200_v59, 0.0  ;;  %v3134_v59 = vld [vmem:[%s4084_s0 + $0x1f0] sm:$0xff] }
 0x1c1   :  { %v1742_v62 = vpop.f32.mrf.mxu2  ;;  %v1902_v63 = vpop.f32.mrf.mxu3 }
 0x1c2   :  { %v2328_v0 = vpack.c.bf16 %v2264_v60, %v2264_v60  ;;  %v2069_v1 = vmax.f32 %v1742_v62, %v1902_v63  ;;  %v1424_v2 = vpop.f32.mrf.mxu0  ;;  %v1584_v3 = vpop.f32.mrf.mxu1 }
 0x1c3   :  { %v2006_v12 = vmax.f32 %v1424_v2, %v1584_v3  ;;  %v3198_v2 = vld [vmem:[%s4084_s0 + $0x3f0] sm:$0xff] }
 0x1c4   :  { %2393 = vst.msk [vmem:[%s4086_s3 + $0x94] sm:$0xf] %vm2355_vm3, %v2328_v0  ;;  %v2133_v4 = vmax.f32 %v2005_v61, %v2069_v1  ;;  %v3166_v1 = vld [vmem:[%s4084_s0 + $0x2f0] sm:$0xff] }
 0x1c6   :  { %v2201_v5 = vadd.f32 %v3835_v50, %v2133_v4 }
 0x1c8   :  { %v2265_v6 = vmax.f32 %v2201_v5, 0.0 }
 0x1c9   :  { %v1744_v7 = vpop.f32.mrf.mxu2  ;;  %v1904_v8 = vpop.f32.mrf.mxu3 }
 0x1ca   :  { %v2329_v11 = vpack.c.bf16 %v2265_v6, %v2265_v6  ;;  %v2070_v13 = vmax.f32 %v1744_v7, %v1904_v8  ;;  %v1427_v14 = vpop.f32.mrf.mxu0  ;;  %v1587_v15 = vpop.f32.mrf.mxu1 }
 0x1cb   :  { %v2007_v21 = vmax.f32 %v1427_v14, %v1587_v15 }
 0x1cc   :  { %2394 = vst.msk [vmem:[%s4086_s3 + $0x98] sm:$0xf] %vm2355_vm3, %v2329_v11  ;;  %v2134_v18 = vmax.f32 %v2006_v12, %v2070_v13 }
 0x1cd   :  { %2972 = vmatmul.msk.bf16.gmra.mxu0 %vm926_vm2, %v3100_v9  ;;  %3004 = vmatmul.msk.bf16.gmra.mxu1 %vm926_vm2, %v3132_v10 }
 0x1ce   :  { %v2202_v19 = vadd.f32 %v3835_v50, %v2134_v18  ;;  %3036 = vmatmul.msk.bf16.gmra.mxu2 %vm926_vm2, %v3164_v16  ;;  %3068 = vmatmul.msk.bf16.gmra.mxu3 %vm926_vm2, %v3196_v17  ;;  %v3103_v18 = vld [vmem:[%s4084_s0 + $0xf8] sm:$0xff] }
 0x1d0   :  { %v2266_v20 = vmax.f32 %v2202_v19, 0.0  ;;  %v3135_v19 = vld [vmem:[%s4084_s0 + $0x1f8] sm:$0xff] }
 0x1d1   :  { %v1747_v22 = vpop.f32.mrf.mxu2  ;;  %v1907_v23 = vpop.f32.mrf.mxu3 }
 0x1d2   :  { %v2330_v24 = vpack.c.bf16 %v2266_v20, %v2266_v20  ;;  %v2071_v25 = vmax.f32 %v1747_v22, %v1907_v23  ;;  %v1429_v26 = vpop.f32.mrf.mxu0  ;;  %v1589_v27 = vpop.f32.mrf.mxu1 }
 0x1d3   :  { %v2008_v36 = vmax.f32 %v1429_v26, %v1589_v27  ;;  %v3199_v26 = vld [vmem:[%s4084_s0 + $0x3f8] sm:$0xff] }
 0x1d4   :  { %2395 = vst.msk [vmem:[%s4086_s3 + $0x9c] sm:$0xf] %vm2355_vm3, %v2330_v24  ;;  %v2135_v28 = vmax.f32 %v2007_v21, %v2071_v25  ;;  %v3167_v25 = vld [vmem:[%s4084_s0 + $0x2f8] sm:$0xff] }
 0x1d6   :  { %v2203_v29 = vadd.f32 %v3835_v50, %v2135_v28 }
 0x1d8   :  { %v2267_v30 = vmax.f32 %v2203_v29, 0.0 }
 0x1d9   :  { %v1749_v31 = vpop.f32.mrf.mxu2  ;;  %v1909_v32 = vpop.f32.mrf.mxu3 }
 0x1da   :  { %v2331_v35 = vpack.c.bf16 %v2267_v30, %v2267_v30  ;;  %v2072_v37 = vmax.f32 %v1749_v31, %v1909_v32  ;;  %v1432_v38 = vpop.f32.mrf.mxu0  ;;  %v1592_v39 = vpop.f32.mrf.mxu1 }
 0x1db   :  { %v2009_v45 = vmax.f32 %v1432_v38, %v1592_v39 }
 0x1dc   :  { %2396 = vst.msk [vmem:[%s4086_s3 + $0xa0] sm:$0xf] %vm2355_vm3, %v2331_v35  ;;  %v2136_v42 = vmax.f32 %v2008_v36, %v2072_v37 }
 0x1dd   :  { %2973 = vmatmul.msk.bf16.gmra.mxu0 %vm926_vm2, %v3101_v33  ;;  %3005 = vmatmul.msk.bf16.gmra.mxu1 %vm926_vm2, %v3133_v34 }
 0x1de   :  { %v2204_v43 = vadd.f32 %v3835_v50, %v2136_v42  ;;  %3037 = vmatmul.msk.bf16.gmra.mxu2 %vm926_vm2, %v3165_v40  ;;  %3069 = vmatmul.msk.bf16.gmra.mxu3 %vm926_vm2, %v3197_v41 }
 0x1e0   :  { %v2268_v44 = vmax.f32 %v2204_v43, 0.0 }
 0x1e1   :  { %v1752_v46 = vpop.f32.mrf.mxu2  ;;  %v1912_v47 = vpop.f32.mrf.mxu3 }
 0x1e2   :  { %v2332_v48 = vpack.c.bf16 %v2268_v44, %v2268_v44  ;;  %v2073_v49 = vmax.f32 %v1752_v46, %v1912_v47  ;;  %v1434_v51 = vpop.f32.mrf.mxu0  ;;  %v1594_v52 = vpop.f32.mrf.mxu1 }
 0x1e3   :  { %v2010_v61 = vmax.f32 %v1434_v51, %v1594_v52 }
 0x1e4   :  { %2397 = vst.msk [vmem:[%s4086_s3 + $0xa4] sm:$0xf] %vm2355_vm3, %v2332_v48  ;;  %v2137_v53 = vmax.f32 %v2009_v45, %v2073_v49 }
 0x1e6   :  { %v2205_v54 = vadd.f32 %v3835_v50, %v2137_v53 }
 0x1e8   :  { %v2269_v55 = vmax.f32 %v2205_v54, 0.0 }
 0x1e9   :  { %v1754_v56 = vpop.f32.mrf.mxu2  ;;  %v1914_v57 = vpop.f32.mrf.mxu3 }
 0x1ea   :  { %v2333_v60 = vpack.c.bf16 %v2269_v55, %v2269_v55  ;;  %v2074_v62 = vmax.f32 %v1754_v56, %v1914_v57  ;;  %v1437_v63 = vpop.f32.mrf.mxu0  ;;  %v1597_v0 = vpop.f32.mrf.mxu1 }
 0x1eb   :  { %v2011_v6 = vmax.f32 %v1437_v63, %v1597_v0 }
 0x1ec   :  { %2398 = vst.msk [vmem:[%s4086_s3 + $0xa8] sm:$0xf] %vm2355_vm3, %v2333_v60  ;;  %v2138_v3 = vmax.f32 %v2010_v61, %v2074_v62 }
 0x1ed   :  { %2974 = vmatmul.msk.bf16.gmra.mxu0 %vm926_vm2, %v3102_v58  ;;  %3006 = vmatmul.msk.bf16.gmra.mxu1 %vm926_vm2, %v3134_v59 }
 0x1ee   :  { %v2206_v4 = vadd.f32 %v3835_v50, %v2138_v3  ;;  %3038 = vmatmul.msk.bf16.gmra.mxu2 %vm926_vm2, %v3166_v1  ;;  %3070 = vmatmul.msk.bf16.gmra.mxu3 %vm926_vm2, %v3198_v2 }
 0x1f0   :  { %v2270_v5 = vmax.f32 %v2206_v4, 0.0 }
 0x1f1   :  { %v1757_v7 = vpop.f32.mrf.mxu2  ;;  %v1917_v8 = vpop.f32.mrf.mxu3 }
 0x1f2   :  { %v2334_v9 = vpack.c.bf16 %v2270_v5, %v2270_v5  ;;  %v2075_v10 = vmax.f32 %v1757_v7, %v1917_v8  ;;  %v1439_v11 = vpop.f32.mrf.mxu0  ;;  %v1599_v12 = vpop.f32.mrf.mxu1 }
 0x1f3   :  { %v2012_v21 = vmax.f32 %v1439_v11, %v1599_v12 }
 0x1f4   :  { %2399 = vst.msk [vmem:[%s4086_s3 + $0xac] sm:$0xf] %vm2355_vm3, %v2334_v9  ;;  %v2139_v13 = vmax.f32 %v2011_v6, %v2075_v10 }
 0x1f6   :  { %v2207_v14 = vadd.f32 %v3835_v50, %v2139_v13 }
 0x1f8   :  { %v2271_v15 = vmax.f32 %v2207_v14, 0.0 }
 0x1f9   :  { %v1759_v16 = vpop.f32.mrf.mxu2  ;;  %v1919_v17 = vpop.f32.mrf.mxu3 }
 0x1fa   :  { %v2335_v20 = vpack.c.bf16 %v2271_v15, %v2271_v15  ;;  %v2076_v22 = vmax.f32 %v1759_v16, %v1919_v17  ;;  %v1442_v23 = vpop.f32.mrf.mxu0  ;;  %v1602_v24 = vpop.f32.mrf.mxu1 }
 0x1fb   :  { %v2013_v30 = vmax.f32 %v1442_v23, %v1602_v24 }
 0x1fc   :  { %2400 = vst.msk [vmem:[%s4086_s3 + $0xb0] sm:$0xf] %vm2355_vm3, %v2335_v20  ;;  %v2140_v27 = vmax.f32 %v2012_v21, %v2076_v22 }
 0x1fd   :  { %2975 = vmatmul.msk.bf16.gmra.mxu0 %vm926_vm2, %v3103_v18  ;;  %3007 = vmatmul.msk.bf16.gmra.mxu1 %vm926_vm2, %v3135_v19 }
 0x1fe   :  { %v2208_v28 = vadd.f32 %v3835_v50, %v2140_v27  ;;  %3039 = vmatmul.msk.bf16.gmra.mxu2 %vm926_vm2, %v3167_v25  ;;  %3071 = vmatmul.msk.bf16.gmra.mxu3 %vm926_vm2, %v3199_v26 }
 0x200   :  { %v2272_v29 = vmax.f32 %v2208_v28, 0.0 }
 0x201   :  { %v1762_v31 = vpop.f32.mrf.mxu2  ;;  %v1922_v32 = vpop.f32.mrf.mxu3 }
 0x202   :  { %v2336_v33 = vpack.c.bf16 %v2272_v29, %v2272_v29  ;;  %v2077_v34 = vmax.f32 %v1762_v31, %v1922_v32  ;;  %v1444_v35 = vpop.f32.mrf.mxu0  ;;  %v1604_v36 = vpop.f32.mrf.mxu1 }
 0x203   :  { %v2014_v43 = vmax.f32 %v1444_v35, %v1604_v36 }
 0x204   :  { %2401 = vst.msk [vmem:[%s4086_s3 + $0xb4] sm:$0xf] %vm2355_vm3, %v2336_v33  ;;  %v2141_v37 = vmax.f32 %v2013_v30, %v2077_v34 }
 0x206   :  { %v2209_v38 = vadd.f32 %v3835_v50, %v2141_v37 }
 0x208   :  { %v2273_v39 = vmax.f32 %v2209_v38, 0.0 }
 0x209   :  { %v1764_v40 = vpop.f32.mrf.mxu2  ;;  %v1924_v41 = vpop.f32.mrf.mxu3 }
 0x20a   :  { %v2337_v42 = vpack.c.bf16 %v2273_v39, %v2273_v39  ;;  %v2078_v44 = vmax.f32 %v1764_v40, %v1924_v41  ;;  %v1447_v45 = vpop.f32.mrf.mxu0  ;;  %v1607_v46 = vpop.f32.mrf.mxu1 }
 0x20b   :  { %v2015_v51 = vmax.f32 %v1447_v45, %v1607_v46 }
 0x20c   :  { %2402 = vst.msk [vmem:[%s4086_s3 + $0xb8] sm:$0xf] %vm2355_vm3, %v2337_v42  ;;  %v2142_v47 = vmax.f32 %v2014_v43, %v2078_v44 }
 0x20e   :  { %v2210_v48 = vadd.f32 %v3835_v50, %v2142_v47 }
 0x210   :  { %v2274_v49 = vmax.f32 %v2210_v48, 0.0 }
 0x211   :  { %v1767_v52 = vpop.f32.mrf.mxu2  ;;  %v1927_v53 = vpop.f32.mrf.mxu3 }
 0x212   :  { %v2338_v54 = vpack.c.bf16 %v2274_v49, %v2274_v49  ;;  %v2079_v55 = vmax.f32 %v1767_v52, %v1927_v53  ;;  %v1449_v56 = vpop.f32.mrf.mxu0  ;;  %v1609_v57 = vpop.f32.mrf.mxu1 }
 0x213   :  { %v2016_v0 = vmax.f32 %v1449_v56, %v1609_v57 }
 0x214   :  { %2403 = vst.msk [vmem:[%s4086_s3 + $0xbc] sm:$0xf] %vm2355_vm3, %v2338_v54  ;;  %v2143_v58 = vmax.f32 %v2015_v51, %v2079_v55 }
 0x216   :  { %v2211_v59 = vadd.f32 %v3835_v50, %v2143_v58 }
 0x218   :  { %v2275_v60 = vmax.f32 %v2211_v59, 0.0 }
 0x219   :  { %v1769_v61 = vpop.f32.mrf.mxu2  ;;  %v1929_v62 = vpop.f32.mrf.mxu3 }
 0x21a   :  { %v2339_v63 = vpack.c.bf16 %v2275_v60, %v2275_v60  ;;  %v2080_v1 = vmax.f32 %v1769_v61, %v1929_v62  ;;  %v1452_v2 = vpop.f32.mrf.mxu0  ;;  %v1612_v3 = vpop.f32.mrf.mxu1 }
 0x21b   :  { %v2017_v7 = vmax.f32 %v1452_v2, %v1612_v3 }
 0x21c   :  { %2404 = vst.msk [vmem:[%s4086_s3 + $0xc0] sm:$0xf] %vm2355_vm3, %v2339_v63  ;;  %v2144_v4 = vmax.f32 %v2016_v0, %v2080_v1 }
 0x21e   :  { %v2212_v5 = vadd.f32 %v3835_v50, %v2144_v4 }
 0x220   :  { %v2276_v6 = vmax.f32 %v2212_v5, 0.0 }
 0x221   :  { %v1772_v8 = vpop.f32.mrf.mxu2  ;;  %v1932_v9 = vpop.f32.mrf.mxu3 }
 0x222   :  { %v2340_v10 = vpack.c.bf16 %v2276_v6, %v2276_v6  ;;  %v2081_v11 = vmax.f32 %v1772_v8, %v1932_v9  ;;  %v1454_v12 = vpop.f32.mrf.mxu0  ;;  %v1614_v13 = vpop.f32.mrf.mxu1 }
 0x223   :  { %v2018_v20 = vmax.f32 %v1454_v12, %v1614_v13 }
 0x224   :  { %2405 = vst.msk [vmem:[%s4086_s3 + $0xc4] sm:$0xf] %vm2355_vm3, %v2340_v10  ;;  %v2145_v14 = vmax.f32 %v2017_v7, %v2081_v11 }
 0x226   :  { %v2213_v15 = vadd.f32 %v3835_v50, %v2145_v14 }
 0x228   :  { %v2277_v16 = vmax.f32 %v2213_v15, 0.0 }
 0x229   :  { %v1774_v17 = vpop.f32.mrf.mxu2  ;;  %v1934_v18 = vpop.f32.mrf.mxu3 }
 0x22a   :  { %v2341_v19 = vpack.c.bf16 %v2277_v16, %v2277_v16  ;;  %v2082_v21 = vmax.f32 %v1774_v17, %v1934_v18  ;;  %v1457_v22 = vpop.f32.mrf.mxu0  ;;  %v1617_v23 = vpop.f32.mrf.mxu1 }
 0x22b   :  { %v2019_v27 = vmax.f32 %v1457_v22, %v1617_v23 }
 0x22c   :  { %2406 = vst.msk [vmem:[%s4086_s3 + $0xc8] sm:$0xf] %vm2355_vm3, %v2341_v19  ;;  %v2146_v24 = vmax.f32 %v2018_v20, %v2082_v21 }
 0x22e   :  { %v2214_v25 = vadd.f32 %v3835_v50, %v2146_v24 }
 0x230   :  { %v2278_v26 = vmax.f32 %v2214_v25, 0.0 }
 0x231   :  { %v1777_v28 = vpop.f32.mrf.mxu2  ;;  %v1937_v29 = vpop.f32.mrf.mxu3 }
 0x232   :  { %v2342_v30 = vpack.c.bf16 %v2278_v26, %v2278_v26  ;;  %v2083_v31 = vmax.f32 %v1777_v28, %v1937_v29  ;;  %v1459_v32 = vpop.f32.mrf.mxu0  ;;  %v1619_v33 = vpop.f32.mrf.mxu1 }
 0x233   :  { %v2020_v40 = vmax.f32 %v1459_v32, %v1619_v33 }
 0x234   :  { %2407 = vst.msk [vmem:[%s4086_s3 + $0xcc] sm:$0xf] %vm2355_vm3, %v2342_v30  ;;  %v2147_v34 = vmax.f32 %v2019_v27, %v2083_v31 }
 0x236   :  { %v2215_v35 = vadd.f32 %v3835_v50, %v2147_v34 }
 0x238   :  { %v2279_v36 = vmax.f32 %v2215_v35, 0.0 }
 0x239   :  { %v1779_v37 = vpop.f32.mrf.mxu2  ;;  %v1939_v38 = vpop.f32.mrf.mxu3 }
 0x23a   :  { %v2343_v39 = vpack.c.bf16 %v2279_v36, %v2279_v36  ;;  %v2084_v41 = vmax.f32 %v1779_v37, %v1939_v38  ;;  %v1462_v42 = vpop.f32.mrf.mxu0  ;;  %v1622_v43 = vpop.f32.mrf.mxu1 }
 0x23b   :  { %v2021_v47 = vmax.f32 %v1462_v42, %v1622_v43 }
 0x23c   :  { %2408 = vst.msk [vmem:[%s4086_s3 + $0xd0] sm:$0xf] %vm2355_vm3, %v2343_v39  ;;  %v2148_v44 = vmax.f32 %v2020_v40, %v2084_v41 }
 0x23e   :  { %v2216_v45 = vadd.f32 %v3835_v50, %v2148_v44 }
 0x240   :  { %v2280_v46 = vmax.f32 %v2216_v45, 0.0 }
 0x241   :  { %v1782_v48 = vpop.f32.mrf.mxu2  ;;  %v1942_v49 = vpop.f32.mrf.mxu3 }
 0x242   :  { %v2344_v51 = vpack.c.bf16 %v2280_v46, %v2280_v46  ;;  %v2085_v52 = vmax.f32 %v1782_v48, %v1942_v49  ;;  %v1464_v53 = vpop.f32.mrf.mxu0  ;;  %v1624_v54 = vpop.f32.mrf.mxu1 }
 0x243   :  { %v2022_v61 = vmax.f32 %v1464_v53, %v1624_v54 }
 0x244   :  { %2409 = vst.msk [vmem:[%s4086_s3 + $0xd4] sm:$0xf] %vm2355_vm3, %v2344_v51  ;;  %v2149_v55 = vmax.f32 %v2021_v47, %v2085_v52 }
 0x246   :  { %v2217_v56 = vadd.f32 %v3835_v50, %v2149_v55 }
 0x248   :  { %v2281_v57 = vmax.f32 %v2217_v56, 0.0 }
 0x249   :  { %v1784_v58 = vpop.f32.mrf.mxu2  ;;  %v1944_v59 = vpop.f32.mrf.mxu3 }
 0x24a   :  { %v2345_v60 = vpack.c.bf16 %v2281_v57, %v2281_v57  ;;  %v2086_v62 = vmax.f32 %v1784_v58, %v1944_v59  ;;  %v1467_v63 = vpop.f32.mrf.mxu0  ;;  %v1627_v0 = vpop.f32.mrf.mxu1 }
 0x24b   :  { %v2023_v4 = vmax.f32 %v1467_v63, %v1627_v0 }
 0x24c   :  { %2410 = vst.msk [vmem:[%s4086_s3 + $0xd8] sm:$0xf] %vm2355_vm3, %v2345_v60  ;;  %v2150_v1 = vmax.f32 %v2022_v61, %v2086_v62 }
 0x24e   :  { %v2218_v2 = vadd.f32 %v3835_v50, %v2150_v1 }
 0x250   :  { %v2282_v3 = vmax.f32 %v2218_v2, 0.0 }
 0x251   :  { %v1787_v5 = vpop.f32.mrf.mxu2  ;;  %v1947_v6 = vpop.f32.mrf.mxu3 }
 0x252   :  { %v2346_v7 = vpack.c.bf16 %v2282_v3, %v2282_v3  ;;  %v2087_v8 = vmax.f32 %v1787_v5, %v1947_v6  ;;  %v1469_v9 = vpop.f32.mrf.mxu0  ;;  %v1629_v10 = vpop.f32.mrf.mxu1 }
 0x253   :  { %v2024_v17 = vmax.f32 %v1469_v9, %v1629_v10 }
 0x254   :  { %2411 = vst.msk [vmem:[%s4086_s3 + $0xdc] sm:$0xf] %vm2355_vm3, %v2346_v7  ;;  %v2151_v11 = vmax.f32 %v2023_v4, %v2087_v8 }
 0x256   :  { %v2219_v12 = vadd.f32 %v3835_v50, %v2151_v11 }
 0x258   :  { %v2283_v13 = vmax.f32 %v2219_v12, 0.0 }
 0x259   :  { %v1789_v14 = vpop.f32.mrf.mxu2  ;;  %v1949_v15 = vpop.f32.mrf.mxu3 }
 0x25a   :  { %v2347_v16 = vpack.c.bf16 %v2283_v13, %v2283_v13  ;;  %v2088_v18 = vmax.f32 %v1789_v14, %v1949_v15  ;;  %v1472_v19 = vpop.f32.mrf.mxu0  ;;  %v1632_v20 = vpop.f32.mrf.mxu1 }
 0x25b   :  { %v2025_v24 = vmax.f32 %v1472_v19, %v1632_v20 }
 0x25c   :  { %2412 = vst.msk [vmem:[%s4086_s3 + $0xe0] sm:$0xf] %vm2355_vm3, %v2347_v16  ;;  %v2152_v21 = vmax.f32 %v2024_v17, %v2088_v18 }
 0x25e   :  { %v2220_v22 = vadd.f32 %v3835_v50, %v2152_v21 }
 0x260   :  { %v2284_v23 = vmax.f32 %v2220_v22, 0.0 }
 0x261   :  { %v1792_v25 = vpop.f32.mrf.mxu2  ;;  %v1952_v26 = vpop.f32.mrf.mxu3 }
 0x262   :  { %v2348_v27 = vpack.c.bf16 %v2284_v23, %v2284_v23  ;;  %v2089_v28 = vmax.f32 %v1792_v25, %v1952_v26  ;;  %v1474_v29 = vpop.f32.mrf.mxu0  ;;  %v1634_v30 = vpop.f32.mrf.mxu1 }
 0x263   :  { %v2026_v37 = vmax.f32 %v1474_v29, %v1634_v30 }
 0x264   :  { %2413 = vst.msk [vmem:[%s4086_s3 + $0xe4] sm:$0xf] %vm2355_vm3, %v2348_v27  ;;  %v2153_v31 = vmax.f32 %v2025_v24, %v2089_v28 }
 0x266   :  { %v2221_v32 = vadd.f32 %v3835_v50, %v2153_v31 }
 0x268   :  { %v2285_v33 = vmax.f32 %v2221_v32, 0.0 }
 0x269   :  { %v1794_v34 = vpop.f32.mrf.mxu2  ;;  %v1954_v35 = vpop.f32.mrf.mxu3 }
 0x26a   :  { %v2349_v36 = vpack.c.bf16 %v2285_v33, %v2285_v33  ;;  %v2090_v38 = vmax.f32 %v1794_v34, %v1954_v35  ;;  %v1477_v39 = vpop.f32.mrf.mxu0  ;;  %v1637_v40 = vpop.f32.mrf.mxu1 }
 0x26b   :  { %v2027_v44 = vmax.f32 %v1477_v39, %v1637_v40 }
 0x26c   :  { %2414 = vst.msk [vmem:[%s4086_s3 + $0xe8] sm:$0xf] %vm2355_vm3, %v2349_v36  ;;  %v2154_v41 = vmax.f32 %v2026_v37, %v2090_v38 }
 0x26e   :  { %v2222_v42 = vadd.f32 %v3835_v50, %v2154_v41 }
 0x270   :  { %v2286_v43 = vmax.f32 %v2222_v42, 0.0 }
 0x271   :  { %v1797_v45 = vpop.f32.mrf.mxu2  ;;  %v1957_v46 = vpop.f32.mrf.mxu3 }
 0x272   :  { %v2350_v47 = vpack.c.bf16 %v2286_v43, %v2286_v43  ;;  %v2091_v48 = vmax.f32 %v1797_v45, %v1957_v46  ;;  %v1479_v49 = vpop.f32.mrf.mxu0  ;;  %v1639_v51 = vpop.f32.mrf.mxu1 }
 0x273   :  { %v2028_v58 = vmax.f32 %v1479_v49, %v1639_v51 }
 0x274   :  { %2415 = vst.msk [vmem:[%s4086_s3 + $0xec] sm:$0xf] %vm2355_vm3, %v2350_v47  ;;  %v2155_v52 = vmax.f32 %v2027_v44, %v2091_v48 }
 0x276   :  { %v2223_v53 = vadd.f32 %v3835_v50, %v2155_v52 }
 0x278   :  { %v2287_v54 = vmax.f32 %v2223_v53, 0.0 }
 0x279   :  { %v1799_v55 = vpop.f32.mrf.mxu2  ;;  %v1959_v56 = vpop.f32.mrf.mxu3 }
 0x27a   :  { %v2351_v57 = vpack.c.bf16 %v2287_v54, %v2287_v54  ;;  %v2092_v59 = vmax.f32 %v1799_v55, %v1959_v56  ;;  %v1482_v61 = vpop.f32.mrf.mxu0  ;;  %v1642_v62 = vpop.f32.mrf.mxu1 }
 0x27b   :  { %v2029_v1 = vmax.f32 %v1482_v61, %v1642_v62 }
 0x27c   :  { %2416 = vst.msk [vmem:[%s4086_s3 + $0xf0] sm:$0xf] %vm2355_vm3, %v2351_v57  ;;  %v2156_v60 = vmax.f32 %v2028_v58, %v2092_v59 }
 0x27e   :  { %v2224_v63 = vadd.f32 %v3835_v50, %v2156_v60 }
 0x280   :  { %v2288_v0 = vmax.f32 %v2224_v63, 0.0 }
 0x281   :  { %v1802_v2 = vpop.f32.mrf.mxu2  ;;  %v1962_v3 = vpop.f32.mrf.mxu3 }
 0x282   :  { %v2352_v4 = vpack.c.bf16 %v2288_v0, %v2288_v0  ;;  %v2093_v5 = vmax.f32 %v1802_v2, %v1962_v3  ;;  %v1484_v8 = vpop.f32.mrf.mxu0  ;;  %v1644_v9 = vpop.f32.mrf.mxu1 }
 0x283   :  { %v2030_v14 = vmax.f32 %v1484_v8, %v1644_v9 }
 0x284   :  { %2417 = vst.msk [vmem:[%s4086_s3 + $0xf4] sm:$0xf] %vm2355_vm3, %v2352_v4  ;;  %v2157_v6 = vmax.f32 %v2029_v1, %v2093_v5 }
 0x286   :  { %v2225_v7 = vadd.f32 %v3835_v50, %v2157_v6 }
 0x288   :  { %v2289_v10 = vmax.f32 %v2225_v7, 0.0 }
 0x289   :  { %v1804_v11 = vpop.f32.mrf.mxu2  ;;  %v1964_v12 = vpop.f32.mrf.mxu3 }
 0x28a   :  { %v2353_v13 = vpack.c.bf16 %v2289_v10, %v2289_v10  ;;  %v2094_v15 = vmax.f32 %v1804_v11, %v1964_v12 }
 0x28c   :  { %2418 = vst.msk [vmem:[%s4086_s3 + $0xf8] sm:$0xf] %vm2355_vm3, %v2353_v13  ;;  %v2158_v16 = vmax.f32 %v2030_v14, %v2094_v15 }
 0x28e   :  { %v2226_v17 = vadd.f32 %v3835_v50, %v2158_v16 }
 0x290   :  { %v2290_v18 = vmax.f32 %v2226_v17, 0.0 }
 0x292   :  { %v2354_v19 = vpack.c.bf16 %v2290_v18, %v2290_v18 }
 0x294   :  { %2419 = vst.msk [vmem:[%s4086_s3 + $0xfc] sm:$0xf] %vm2355_vm3, %v2354_v19 }

// kernel: my_model_forward.3
= control target key start
LH: loop header
LB: loop body
LE: loop exit
PB: predicated region body
PF: predicated region fallthrough
CT: control target
= control target key end

     0   :  { %s4804_s0 = inlined_call_operand.vmem [shape: bf16[2,4096], index: 0, kind: input, shape index: {}]   ;;  %s4805_s1 = inlined_call_operand.vmem [shape: bf16[4096,128], index: 1, kind: input, shape index: {}]   ;;  %s4806_s2 = inlined_call_operand.vmem [shape: f32[1,128], index: 2, kind: input, shape index: {}]   ;;  %s4807_s3 = inlined_call_operand.vmem [shape: f32[128,10], index: 3, kind: input, shape index: {}]   ;;  %s4808_s4 = inlined_call_operand.vmem [shape: f32[1,10], index: 4, kind: input, shape index: {}]   ;;  %s4809_s5 = inlined_call_operand.hbm [shape: f32[2,10], index: 5, kind: output, shape index: {}]  }
   0x1   :  { %v3655_v0 = vld [vmem:[%s4805_s1 + $0x38] sm:$0xff]  ;;  %v3654_v4 = vld [vmem:[%s4805_s1 + $0x30] sm:$0xff]  ;;  %v3653_v8 = vld [vmem:[%s4805_s1 + $0x28] sm:$0xff] }
   0x2   :  { %v3663_v1 = vld [vmem:[%s4805_s1 + $0x78] sm:$0xff]  ;;  %2149 = vmatpush.bf16.msra.mxu0 %v3655_v0  ;;  %v3662_v5 = vld [vmem:[%s4805_s1 + $0x70] sm:$0xff]  ;;  %v3661_v9 = vld [vmem:[%s4805_s1 + $0x68] sm:$0xff] }
   0x3   :  { %v3671_v2 = vld [vmem:[%s4805_s1 + $0xb8] sm:$0xff]  ;;  %2162 = vmatpush.bf16.msra.mxu1 %v3663_v1  ;;  %v3670_v6 = vld [vmem:[%s4805_s1 + $0xb0] sm:$0xff]  ;;  %v3669_v10 = vld [vmem:[%s4805_s1 + $0xa8] sm:$0xff] }
   0x4   :  { %v3679_v3 = vld [vmem:[%s4805_s1 + $0xf8] sm:$0xff]  ;;  %2175 = vmatpush.bf16.msra.mxu2 %v3671_v2  ;;  %v3678_v7 = vld [vmem:[%s4805_s1 + $0xf0] sm:$0xff]  ;;  %v3677_v11 = vld [vmem:[%s4805_s1 + $0xe8] sm:$0xff] }
   0x5   :  { %2188 = vmatpush.bf16.msra.mxu3 %v3679_v3  ;;  %v3652_v12 = vld [vmem:[%s4805_s1 + $0x20] sm:$0xff]  ;;  %v3651_v16 = vld [vmem:[%s4805_s1 + $0x18] sm:$0xff]  ;;  %v3650_v20 = vld [vmem:[%s4805_s1 + $0x10] sm:$0xff] }
   0x6   :  { %2150 = vmatpush.bf16.msra.mxu0 %v3654_v4  ;;  %v3660_v13 = vld [vmem:[%s4805_s1 + $0x60] sm:$0xff]  ;;  %v3659_v17 = vld [vmem:[%s4805_s1 + $0x58] sm:$0xff]  ;;  %v3658_v21 = vld [vmem:[%s4805_s1 + $0x50] sm:$0xff] }
   0x7   :  { %2163 = vmatpush.bf16.msra.mxu1 %v3662_v5  ;;  %v3668_v14 = vld [vmem:[%s4805_s1 + $0xa0] sm:$0xff]  ;;  %v3667_v18 = vld [vmem:[%s4805_s1 + $0x98] sm:$0xff]  ;;  %v3666_v23 = vld [vmem:[%s4805_s1 + $0x90] sm:$0xff] }
   0x8   :  { %2176 = vmatpush.bf16.msra.mxu2 %v3670_v6  ;;  %v3676_v15 = vld [vmem:[%s4805_s1 + $0xe0] sm:$0xff]  ;;  %v3675_v19 = vld [vmem:[%s4805_s1 + $0xd8] sm:$0xff]  ;;  %v3674_v24 = vld [vmem:[%s4805_s1 + $0xd0] sm:$0xff] }
   0x9   :  { %2189 = vmatpush.bf16.msra.mxu3 %v3678_v7  ;;  %v21_v22 = vld [vmem:[%s4804_s0] sm:$0xff] }
   0xa   :  { %2151 = vmatpush.bf16.msra.mxu0 %v3653_v8  ;;  %542 = vst [vmem:[#allocation1] ss:$9 sm:$0xff] %v21_v22 }
   0xb   :  { %2164 = vmatpush.bf16.msra.mxu1 %v3661_v9 }
   0xc   :  { %2177 = vmatpush.bf16.msra.mxu2 %v3669_v10 }
   0xd   :  { %2190 = vmatpush.bf16.msra.mxu3 %v3677_v11 }
   0xe   :  { %2152 = vmatpush.bf16.msra.mxu0 %v3652_v12 }
   0xf   :  { %2165 = vmatpush.bf16.msra.mxu1 %v3660_v13 }
  0x10   :  { %2178 = vmatpush.bf16.msra.mxu2 %v3668_v14 }
  0x11   :  { %2191 = vmatpush.bf16.msra.mxu3 %v3676_v15 }
  0x12   :  { %2153 = vmatpush.bf16.msra.mxu0 %v3651_v16 }
  0x13   :  { %2166 = vmatpush.bf16.msra.mxu1 %v3659_v17 }
  0x14   :  { %2179 = vmatpush.bf16.msra.mxu2 %v3667_v18 }
  0x15   :  { %2192 = vmatpush.bf16.msra.mxu3 %v3675_v19 }
  0x16   :  { %10 = vsyncpa [#allocation3], 0  ;;  %2154 = vmatpush.bf16.msra.mxu0 %v3650_v20  ;;  %v3649_v25 = vld [vmem:[%s4805_s1 + $0x8] sm:$0xff]  ;;  %v3648_v29 = vld [vmem:[%s4805_s1] sm:$0xff]  ;;  %s3933_s7 = smov [#allocation2]   ;;  %s2615_s10 = sshll.u32 %s4809_s5, 4  ;;  %s2616_s10 = int_to_ptr.hbm [resolvable:$true] %s2615_s10 }
  0x17   :  { %2167 = vmatpush.bf16.msra.mxu1 %v3658_v21  ;;  %v3657_v26 = vld [vmem:[%s4805_s1 + $0x48] sm:$0xff]  ;;  %v3656_v30 = vld [vmem:[%s4805_s1 + $0x40] sm:$0xff]  ;;  %v3687_v33 = vld [vmem:[%s4805_s1 + $0x138] sm:$0xff]  ;;  %s2613_s8 = sshll.u32 %s3933_s7, 4  ;;  %vm2606_vm0 = vcmask 74752   ;;  %s2614_s8 = int_to_ptr.vmem [resolvable:$true] %s2613_s8 }
  0x18   :  { %2180 = vmatpush.bf16.msra.mxu2 %v3666_v23  ;;  %v3665_v27 = vld [vmem:[%s4805_s1 + $0x88] sm:$0xff]  ;;  %v3664_v31 = vld [vmem:[%s4805_s1 + $0x80] sm:$0xff]  ;;  %v3695_v34 = vld [vmem:[%s4805_s1 + $0x178] sm:$0xff] }
  0x19   :  { %2193 = vmatpush.bf16.msra.mxu3 %v3674_v24  ;;  %v3673_v28 = vld [vmem:[%s4805_s1 + $0xc8] sm:$0xff]  ;;  %v3672_v32 = vld [vmem:[%s4805_s1 + $0xc0] sm:$0xff]  ;;  %v3703_v35 = vld [vmem:[%s4805_s1 + $0x1b8] sm:$0xff] }
  0x1a   :  { %2155 = vmatpush.bf16.msra.mxu0 %v3649_v25  ;;  %v3711_v36 = vld [vmem:[%s4805_s1 + $0x1f8] sm:$0xff]  ;;  %v3686_v37 = vld [vmem:[%s4805_s1 + $0x130] sm:$0xff]  ;;  %v543_v39 = vld [vmem:[#allocation1] sm:$0xff] }
  0x1b   :  { %2168 = vmatpush.bf16.msra.mxu1 %v3657_v26  ;;  %v545_v38 = vld [vmem:[#allocation1 + $0x12] sm:$0xff]  ;;  %v546_v41 = vld [vmem:[#allocation1 + $0x1b] sm:$0xff]  ;;  %v544_v42 = vld [vmem:[#allocation1 + $0x9] sm:$0xff] }
  0x1c   :  { %2181 = vmatpush.bf16.msra.mxu2 %v3665_v27  ;;  %v3694_v40 = vld [vmem:[%s4805_s1 + $0x170] sm:$0xff]  ;;  %v3685_v45 = vld [vmem:[%s4805_s1 + $0x128] sm:$0xff]  ;;  %v3684_v49 = vld [vmem:[%s4805_s1 + $0x120] sm:$0xff] }
  0x1d   :  { %2194 = vmatpush.bf16.msra.mxu3 %v3673_v28  ;;  %v3702_v43 = vld [vmem:[%s4805_s1 + $0x1b0] sm:$0xff]  ;;  %v3693_v46 = vld [vmem:[%s4805_s1 + $0x168] sm:$0xff]  ;;  %v3692_v50 = vld [vmem:[%s4805_s1 + $0x160] sm:$0xff] }
  0x1e   :  { %2156 = vmatpush.bf16.msra.mxu0 %v3648_v29  ;;  %v3710_v44 = vld [vmem:[%s4805_s1 + $0x1f0] sm:$0xff]  ;;  %v3701_v47 = vld [vmem:[%s4805_s1 + $0x1a8] sm:$0xff]  ;;  %v550_v54 = vld [vmem:[#allocation1 + $0x3f] sm:$0xff] }
  0x1f   :  { %2169 = vmatpush.bf16.msra.mxu1 %v3656_v30  ;;  %v3709_v48 = vld [vmem:[%s4805_s1 + $0x1e8] sm:$0xff]  ;;  %v549_v51 = vld [vmem:[#allocation1 + $0x36] sm:$0xff]  ;;  %v3700_v56 = vld [vmem:[%s4805_s1 + $0x1a0] sm:$0xff] }
  0x20   :  { %2182 = vmatpush.bf16.msra.mxu2 %v3664_v31  ;;  %v22_v52 = vld [vmem:[%s4804_s0 + $0x8] sm:$0xff]  ;;  %v3708_v57 = vld [vmem:[%s4805_s1 + $0x1e0] sm:$0xff]  ;;  %v3683_v58 = vld [vmem:[%s4805_s1 + $0x118] sm:$0xff] }
  0x21   :  { %2195 = vmatpush.bf16.msra.mxu3 %v3672_v32  ;;  %2157 = vmatmul.bf16.vlgmr.msra.gmra.mxu0 %v543_v39  ;;  %v547_v53 = vld [vmem:[#allocation1 + $0x24] sm:$0xff]  ;;  %v548_v55 = vld [vmem:[#allocation1 + $0x2d] sm:$0xff]  ;;  %v3691_v59 = vld [vmem:[%s4805_s1 + $0x158] sm:$0xff] }
  0x22   :  { %2201 = vmatpush.bf16.msrb.mxu0 %v3687_v33  ;;  %2170 = vmatmul.bf16.vlgmr.msra.gmra.mxu1 %v544_v42  ;;  %552 = vst [vmem:[#allocation1] ss:$9 sm:$0xff] %v22_v52  ;;  %v3699_v60 = vld [vmem:[%s4805_s1 + $0x198] sm:$0xff]  ;;  %v3682_v62 = vld [vmem:[%s4805_s1 + $0x110] sm:$0xff]  ;;  %v3681_v2 = vld [vmem:[%s4805_s1 + $0x108] sm:$0xff] }
  0x23   :  { %2214 = vmatpush.bf16.msrb.mxu1 %v3695_v34  ;;  %2183 = vmatmul.bf16.vlgmr.msra.gmra.mxu2 %v545_v38  ;;  %v3707_v61 = vld [vmem:[%s4805_s1 + $0x1d8] sm:$0xff]  ;;  %v3690_v63 = vld [vmem:[%s4805_s1 + $0x150] sm:$0xff]  ;;  %v3689_v3 = vld [vmem:[%s4805_s1 + $0x148] sm:$0xff] }
  0x24   :  { %2227 = vmatpush.bf16.msrb.mxu2 %v3703_v35  ;;  %2196 = vmatmul.bf16.vlgmr.msra.gmra.mxu3 %v546_v41  ;;  %v3698_v0 = vld [vmem:[%s4805_s1 + $0x190] sm:$0xff]  ;;  %v3697_v4 = vld [vmem:[%s4805_s1 + $0x188] sm:$0xff]  ;;  %v3680_v6 = vld [vmem:[%s4805_s1 + $0x100] sm:$0xff] }
  0x25   :  { %2240 = vmatpush.bf16.msrb.mxu3 %v3711_v36  ;;  %v3706_v1 = vld [vmem:[%s4805_s1 + $0x1d0] sm:$0xff]  ;;  %v3705_v5 = vld [vmem:[%s4805_s1 + $0x1c8] sm:$0xff]  ;;  %v3688_v7 = vld [vmem:[%s4805_s1 + $0x140] sm:$0xff] }
  0x26   :  { %2202 = vmatpush.bf16.msrb.mxu0 %v3686_v37  ;;  %v3696_v8 = vld [vmem:[%s4805_s1 + $0x180] sm:$0xff]  ;;  %v3719_v10 = vld [vmem:[%s4805_s1 + $0x238] sm:$0xff]  ;;  %v3718_v14 = vld [vmem:[%s4805_s1 + $0x230] sm:$0xff] }
  0x27   :  { %2215 = vmatpush.bf16.msrb.mxu1 %v3694_v40  ;;  %v3704_v9 = vld [vmem:[%s4805_s1 + $0x1c0] sm:$0xff]  ;;  %v3727_v11 = vld [vmem:[%s4805_s1 + $0x278] sm:$0xff]  ;;  %v3726_v15 = vld [vmem:[%s4805_s1 + $0x270] sm:$0xff] }
  0x28   :  { %2228 = vmatpush.bf16.msrb.mxu2 %v3702_v43  ;;  %v3735_v12 = vld [vmem:[%s4805_s1 + $0x2b8] sm:$0xff]  ;;  %v3734_v16 = vld [vmem:[%s4805_s1 + $0x2b0] sm:$0xff]  ;;  %v3717_v18 = vld [vmem:[%s4805_s1 + $0x228] sm:$0xff] }
  0x29   :  { %2241 = vmatpush.bf16.msrb.mxu3 %v3710_v44  ;;  %v3743_v13 = vld [vmem:[%s4805_s1 + $0x2f8] sm:$0xff]  ;;  %v3742_v17 = vld [vmem:[%s4805_s1 + $0x2f0] sm:$0xff]  ;;  %v3725_v19 = vld [vmem:[%s4805_s1 + $0x268] sm:$0xff] }
  0x2a   :  { %2203 = vmatpush.bf16.msrb.mxu0 %v3685_v45  ;;  %v3733_v20 = vld [vmem:[%s4805_s1 + $0x2a8] sm:$0xff]  ;;  %v3716_v22 = vld [vmem:[%s4805_s1 + $0x220] sm:$0xff]  ;;  %v3715_v26 = vld [vmem:[%s4805_s1 + $0x218] sm:$0xff] }
  0x2b   :  { %2216 = vmatpush.bf16.msrb.mxu1 %v3693_v46  ;;  %v3741_v21 = vld [vmem:[%s4805_s1 + $0x2e8] sm:$0xff]  ;;  %v3724_v23 = vld [vmem:[%s4805_s1 + $0x260] sm:$0xff]  ;;  %v3723_v27 = vld [vmem:[%s4805_s1 + $0x258] sm:$0xff] }
  0x2c   :  { %2229 = vmatpush.bf16.msrb.mxu2 %v3701_v47  ;;  %v3732_v24 = vld [vmem:[%s4805_s1 + $0x2a0] sm:$0xff]  ;;  %v3731_v28 = vld [vmem:[%s4805_s1 + $0x298] sm:$0xff]  ;;  %v3714_v30 = vld [vmem:[%s4805_s1 + $0x210] sm:$0xff] }
  0x2d   :  { %2242 = vmatpush.bf16.msrb.mxu3 %v3709_v48  ;;  %v3740_v25 = vld [vmem:[%s4805_s1 + $0x2e0] sm:$0xff]  ;;  %v3739_v29 = vld [vmem:[%s4805_s1 + $0x2d8] sm:$0xff]  ;;  %v3722_v31 = vld [vmem:[%s4805_s1 + $0x250] sm:$0xff] }
  0x2e   :  { %2204 = vmatpush.bf16.msrb.mxu0 %v3684_v49  ;;  %v3730_v32 = vld [vmem:[%s4805_s1 + $0x290] sm:$0xff]  ;;  %v3713_v34 = vld [vmem:[%s4805_s1 + $0x208] sm:$0xff]  ;;  %v3712_v38 = vld [vmem:[%s4805_s1 + $0x200] sm:$0xff] }
  0x2f   :  { %2217 = vmatpush.bf16.msrb.mxu1 %v3692_v50  ;;  %v3738_v33 = vld [vmem:[%s4805_s1 + $0x2d0] sm:$0xff]  ;;  %v3721_v35 = vld [vmem:[%s4805_s1 + $0x248] sm:$0xff]  ;;  %v3720_v39 = vld [vmem:[%s4805_s1 + $0x240] sm:$0xff] }
  0x30   :  { %2230 = vmatpush.bf16.msrb.mxu2 %v3700_v56  ;;  %v3729_v36 = vld [vmem:[%s4805_s1 + $0x288] sm:$0xff]  ;;  %v3728_v40 = vld [vmem:[%s4805_s1 + $0x280] sm:$0xff]  ;;  %v3751_v42 = vld [vmem:[%s4805_s1 + $0x338] sm:$0xff] }
  0x31   :  { %2243 = vmatpush.bf16.msrb.mxu3 %v3708_v57  ;;  %v3737_v37 = vld [vmem:[%s4805_s1 + $0x2c8] sm:$0xff]  ;;  %v3736_v41 = vld [vmem:[%s4805_s1 + $0x2c0] sm:$0xff]  ;;  %v3759_v43 = vld [vmem:[%s4805_s1 + $0x378] sm:$0xff] }
  0x32   :  { %2205 = vmatpush.bf16.msrb.mxu0 %v3683_v58  ;;  %v3767_v44 = vld [vmem:[%s4805_s1 + $0x3b8] sm:$0xff]  ;;  %v553_v46 = vld [vmem:[#allocation1] sm:$0xff]  ;;  %v554_v48 = vld [vmem:[#allocation1 + $0x9] sm:$0xff] }
  0x33   :  { %2218 = vmatpush.bf16.msrb.mxu1 %v3691_v59  ;;  %v3775_v45 = vld [vmem:[%s4805_s1 + $0x3f8] sm:$0xff]  ;;  %v3750_v50 = vld [vmem:[%s4805_s1 + $0x330] sm:$0xff]  ;;  %v3765_v56 = vld [vmem:[%s4805_s1 + $0x3a8] sm:$0xff] }
  0x34   :  { %2231 = vmatpush.bf16.msrb.mxu2 %v3699_v60  ;;  %v555_v47 = vld [vmem:[#allocation1 + $0x12] sm:$0xff]  ;;  %v556_v49 = vld [vmem:[#allocation1 + $0x1b] sm:$0xff]  ;;  %v3773_v57 = vld [vmem:[%s4805_s1 + $0x3e8] sm:$0xff] }
  0x35   :  { %2244 = vmatpush.bf16.msrb.mxu3 %v3707_v61  ;;  %v3766_v52 = vld [vmem:[%s4805_s1 + $0x3b0] sm:$0xff]  ;;  %v3748_v58 = vld [vmem:[%s4805_s1 + $0x320] sm:$0xff] }
  0x36   :  { %2206 = vmatpush.bf16.msrb.mxu0 %v3682_v62  ;;  %v3756_v59 = vld [vmem:[%s4805_s1 + $0x360] sm:$0xff]  ;;  %v3747_v62 = vld [vmem:[%s4805_s1 + $0x318] sm:$0xff] }
  0x37   :  { %2219 = vmatpush.bf16.msrb.mxu1 %v3690_v63  ;;  %v3764_v60 = vld [vmem:[%s4805_s1 + $0x3a0] sm:$0xff]  ;;  %v3755_v63 = vld [vmem:[%s4805_s1 + $0x358] sm:$0xff] }
  0x38   :  { %2232 = vmatpush.bf16.msrb.mxu2 %v3698_v0  ;;  %v3772_v61 = vld [vmem:[%s4805_s1 + $0x3e0] sm:$0xff]  ;;  %v3763_v0 = vld [vmem:[%s4805_s1 + $0x398] sm:$0xff] }
  0x39   :  { %2245 = vmatpush.bf16.msrb.mxu3 %v3706_v1  ;;  %v3771_v1 = vld [vmem:[%s4805_s1 + $0x3d8] sm:$0xff] }
  0x3a   :  { %2207 = vmatpush.bf16.msrb.mxu0 %v3681_v2  ;;  %v3746_v2 = vld [vmem:[%s4805_s1 + $0x310] sm:$0xff] }
  0x3b   :  { %2220 = vmatpush.bf16.msrb.mxu1 %v3689_v3  ;;  %v3754_v3 = vld [vmem:[%s4805_s1 + $0x350] sm:$0xff] }
  0x3c   :  { %2233 = vmatpush.bf16.msrb.mxu2 %v3697_v4  ;;  %v3762_v4 = vld [vmem:[%s4805_s1 + $0x390] sm:$0xff] }
  0x3d   :  { %2246 = vmatpush.bf16.msrb.mxu3 %v3705_v5  ;;  %v3770_v5 = vld [vmem:[%s4805_s1 + $0x3d0] sm:$0xff] }
  0x3e   :  { %2208 = vmatpush.bf16.msrb.mxu0 %v3680_v6  ;;  %v3745_v6 = vld [vmem:[%s4805_s1 + $0x308] sm:$0xff] }
  0x3f   :  { %2221 = vmatpush.bf16.msrb.mxu1 %v3688_v7  ;;  %v3753_v7 = vld [vmem:[%s4805_s1 + $0x348] sm:$0xff] }
  0x40   :  { %2234 = vmatpush.bf16.msrb.mxu2 %v3696_v8  ;;  %v3761_v8 = vld [vmem:[%s4805_s1 + $0x388] sm:$0xff] }
  0x41   :  { %2247 = vmatpush.bf16.msrb.mxu3 %v3704_v9  ;;  %2209 = vmatmul.bf16.vlgmr.msrb.gmra.mxu0 %v547_v53  ;;  %v3774_v53 = vld [vmem:[%s4805_s1 + $0x3f0] sm:$0xff]  ;;  %v3769_v9 = vld [vmem:[%s4805_s1 + $0x3c8] sm:$0xff] }
  0x42   :  { %2253 = vmatpush.bf16.msra.mxu0 %v3719_v10  ;;  %2222 = vmatmul.bf16.vlgmr.msrb.gmra.mxu1 %v548_v55  ;;  %v3757_v55 = vld [vmem:[%s4805_s1 + $0x368] sm:$0xff] }
  0x43   :  { %2266 = vmatpush.bf16.msra.mxu1 %v3727_v11  ;;  %2235 = vmatmul.bf16.vlgmr.msrb.gmra.mxu2 %v549_v51  ;;  %v3758_v51 = vld [vmem:[%s4805_s1 + $0x370] sm:$0xff]  ;;  %v557_v10 = vld [vmem:[#allocation1 + $0x24] sm:$0xff] }
  0x44   :  { %2279 = vmatpush.bf16.msra.mxu2 %v3735_v12  ;;  %2248 = vmatmul.bf16.vlgmr.msrb.gmra.mxu3 %v550_v54  ;;  %v3749_v54 = vld [vmem:[%s4805_s1 + $0x328] sm:$0xff]  ;;  %v559_v11 = vld [vmem:[#allocation1 + $0x36] sm:$0xff] }
  0x45   :  { %2292 = vmatpush.bf16.msra.mxu3 %v3743_v13  ;;  %v558_v12 = vld [vmem:[#allocation1 + $0x2d] sm:$0xff]  ;;  %v560_v13 = vld [vmem:[#allocation1 + $0x3f] sm:$0xff] }
  0x46   :  { %2254 = vmatpush.bf16.msra.mxu0 %v3718_v14  ;;  %v23_v14 = vld [vmem:[%s4804_s0 + $0x10] sm:$0xff] }
  0x47   :  { %2267 = vmatpush.bf16.msra.mxu1 %v3726_v15  ;;  %562 = vst [vmem:[#allocation1] ss:$9 sm:$0xff] %v23_v14  ;;  %v3744_v15 = vld [vmem:[%s4805_s1 + $0x300] sm:$0xff]  ;;  %v3827_v14 = vld [vmem:[%s4805_s1 + $0x598] sm:$0xff] }
  0x48   :  { %2280 = vmatpush.bf16.msra.mxu2 %v3734_v16  ;;  %v3752_v16 = vld [vmem:[%s4805_s1 + $0x340] sm:$0xff] }
  0x49   :  { %2293 = vmatpush.bf16.msra.mxu3 %v3742_v17  ;;  %v3760_v17 = vld [vmem:[%s4805_s1 + $0x380] sm:$0xff] }
  0x4a   :  { %2255 = vmatpush.bf16.msra.mxu0 %v3717_v18  ;;  %v3768_v18 = vld [vmem:[%s4805_s1 + $0x3c0] sm:$0xff] }
  0x4b   :  { %2268 = vmatpush.bf16.msra.mxu1 %v3725_v19  ;;  %v3783_v19 = vld [vmem:[%s4805_s1 + $0x438] sm:$0xff] }
  0x4c   :  { %2281 = vmatpush.bf16.msra.mxu2 %v3733_v20  ;;  %v3791_v20 = vld [vmem:[%s4805_s1 + $0x478] sm:$0xff] }
  0x4d   :  { %2294 = vmatpush.bf16.msra.mxu3 %v3741_v21  ;;  %v3799_v21 = vld [vmem:[%s4805_s1 + $0x4b8] sm:$0xff] }
  0x4e   :  { %2256 = vmatpush.bf16.msra.mxu0 %v3716_v22  ;;  %v3807_v22 = vld [vmem:[%s4805_s1 + $0x4f8] sm:$0xff] }
  0x4f   :  { %2269 = vmatpush.bf16.msra.mxu1 %v3724_v23  ;;  %v3782_v23 = vld [vmem:[%s4805_s1 + $0x430] sm:$0xff] }
  0x50   :  { %2282 = vmatpush.bf16.msra.mxu2 %v3732_v24  ;;  %v3790_v24 = vld [vmem:[%s4805_s1 + $0x470] sm:$0xff] }
  0x51   :  { %2295 = vmatpush.bf16.msra.mxu3 %v3740_v25  ;;  %v3798_v25 = vld [vmem:[%s4805_s1 + $0x4b0] sm:$0xff] }
  0x52   :  { %2257 = vmatpush.bf16.msra.mxu0 %v3715_v26  ;;  %v3806_v26 = vld [vmem:[%s4805_s1 + $0x4f0] sm:$0xff] }
  0x53   :  { %2270 = vmatpush.bf16.msra.mxu1 %v3723_v27  ;;  %v3781_v27 = vld [vmem:[%s4805_s1 + $0x428] sm:$0xff] }
  0x54   :  { %2283 = vmatpush.bf16.msra.mxu2 %v3731_v28  ;;  %v3789_v28 = vld [vmem:[%s4805_s1 + $0x468] sm:$0xff] }
  0x55   :  { %2296 = vmatpush.bf16.msra.mxu3 %v3739_v29  ;;  %v3797_v29 = vld [vmem:[%s4805_s1 + $0x4a8] sm:$0xff] }
  0x56   :  { %2258 = vmatpush.bf16.msra.mxu0 %v3714_v30  ;;  %v3805_v30 = vld [vmem:[%s4805_s1 + $0x4e8] sm:$0xff] }
  0x57   :  { %2271 = vmatpush.bf16.msra.mxu1 %v3722_v31  ;;  %v3780_v31 = vld [vmem:[%s4805_s1 + $0x420] sm:$0xff] }
  0x58   :  { %2284 = vmatpush.bf16.msra.mxu2 %v3730_v32  ;;  %v3788_v32 = vld [vmem:[%s4805_s1 + $0x460] sm:$0xff] }
  0x59   :  { %2297 = vmatpush.bf16.msra.mxu3 %v3738_v33  ;;  %v3796_v33 = vld [vmem:[%s4805_s1 + $0x4a0] sm:$0xff] }
  0x5a   :  { %2259 = vmatpush.bf16.msra.mxu0 %v3713_v34  ;;  %v3804_v34 = vld [vmem:[%s4805_s1 + $0x4e0] sm:$0xff] }
  0x5b   :  { %2272 = vmatpush.bf16.msra.mxu1 %v3721_v35  ;;  %v3779_v35 = vld [vmem:[%s4805_s1 + $0x418] sm:$0xff] }
  0x5c   :  { %2285 = vmatpush.bf16.msra.mxu2 %v3729_v36  ;;  %v3787_v36 = vld [vmem:[%s4805_s1 + $0x458] sm:$0xff] }
  0x5d   :  { %2298 = vmatpush.bf16.msra.mxu3 %v3737_v37  ;;  %v3795_v37 = vld [vmem:[%s4805_s1 + $0x498] sm:$0xff] }
  0x5e   :  { %2260 = vmatpush.bf16.msra.mxu0 %v3712_v38  ;;  %v3803_v38 = vld [vmem:[%s4805_s1 + $0x4d8] sm:$0xff] }
  0x5f   :  { %2273 = vmatpush.bf16.msra.mxu1 %v3720_v39  ;;  %v3778_v39 = vld [vmem:[%s4805_s1 + $0x410] sm:$0xff] }
  0x60   :  { %2286 = vmatpush.bf16.msra.mxu2 %v3728_v40  ;;  %v3786_v40 = vld [vmem:[%s4805_s1 + $0x450] sm:$0xff] }
  0x61   :  { %2299 = vmatpush.bf16.msra.mxu3 %v3736_v41  ;;  %2261 = vmatmul.bf16.vlgmr.msra.gmra.mxu0 %v553_v46  ;;  %v3794_v41 = vld [vmem:[%s4805_s1 + $0x490] sm:$0xff]  ;;  %v3801_v46 = vld [vmem:[%s4805_s1 + $0x4c8] sm:$0xff] }
  0x62   :  { %2305 = vmatpush.bf16.msrb.mxu0 %v3751_v42  ;;  %2274 = vmatmul.bf16.vlgmr.msra.gmra.mxu1 %v554_v48  ;;  %v3802_v42 = vld [vmem:[%s4805_s1 + $0x4d0] sm:$0xff]  ;;  %v3784_v48 = vld [vmem:[%s4805_s1 + $0x440] sm:$0xff] }
  0x63   :  { %2318 = vmatpush.bf16.msrb.mxu1 %v3759_v43  ;;  %2287 = vmatmul.bf16.vlgmr.msra.gmra.mxu2 %v555_v47  ;;  %v3777_v43 = vld [vmem:[%s4805_s1 + $0x408] sm:$0xff]  ;;  %v3776_v47 = vld [vmem:[%s4805_s1 + $0x400] sm:$0xff] }
  0x64   :  { %2331 = vmatpush.bf16.msrb.mxu2 %v3767_v44  ;;  %2300 = vmatmul.bf16.vlgmr.msra.gmra.mxu3 %v556_v49  ;;  %v3785_v44 = vld [vmem:[%s4805_s1 + $0x448] sm:$0xff]  ;;  %v3792_v49 = vld [vmem:[%s4805_s1 + $0x480] sm:$0xff] }
  0x65   :  { %2344 = vmatpush.bf16.msrb.mxu3 %v3775_v45  ;;  %v3793_v45 = vld [vmem:[%s4805_s1 + $0x488] sm:$0xff] }
  0x66   :  { %2306 = vmatpush.bf16.msrb.mxu0 %v3750_v50  ;;  %v3800_v50 = vld [vmem:[%s4805_s1 + $0x4c0] sm:$0xff] }
  0x67   :  { %2319 = vmatpush.bf16.msrb.mxu1 %v3758_v51  ;;  %v3815_v51 = vld [vmem:[%s4805_s1 + $0x538] sm:$0xff] }
  0x68   :  { %2332 = vmatpush.bf16.msrb.mxu2 %v3766_v52  ;;  %v3823_v52 = vld [vmem:[%s4805_s1 + $0x578] sm:$0xff] }
  0x69   :  { %2345 = vmatpush.bf16.msrb.mxu3 %v3774_v53  ;;  %v3831_v53 = vld [vmem:[%s4805_s1 + $0x5b8] sm:$0xff] }
  0x6a   :  { %2307 = vmatpush.bf16.msrb.mxu0 %v3749_v54  ;;  %v3839_v54 = vld [vmem:[%s4805_s1 + $0x5f8] sm:$0xff] }
  0x6b   :  { %2320 = vmatpush.bf16.msrb.mxu1 %v3757_v55  ;;  %v563_v55 = vld [vmem:[#allocation1] sm:$0xff] }
  0x6c   :  { %2333 = vmatpush.bf16.msrb.mxu2 %v3765_v56  ;;  %v565_v56 = vld [vmem:[#allocation1 + $0x12] sm:$0xff] }
  0x6d   :  { %2346 = vmatpush.bf16.msrb.mxu3 %v3773_v57  ;;  %v564_v57 = vld [vmem:[#allocation1 + $0x9] sm:$0xff] }
  0x6e   :  { %2308 = vmatpush.bf16.msrb.mxu0 %v3748_v58  ;;  %v566_v58 = vld [vmem:[#allocation1 + $0x1b] sm:$0xff] }
  0x6f   :  { %2321 = vmatpush.bf16.msrb.mxu1 %v3756_v59  ;;  %v3814_v59 = vld [vmem:[%s4805_s1 + $0x530] sm:$0xff] }
  0x70   :  { %2334 = vmatpush.bf16.msrb.mxu2 %v3764_v60  ;;  %v3822_v60 = vld [vmem:[%s4805_s1 + $0x570] sm:$0xff] }
  0x71   :  { %2347 = vmatpush.bf16.msrb.mxu3 %v3772_v61  ;;  %v3830_v61 = vld [vmem:[%s4805_s1 + $0x5b0] sm:$0xff] }
  0x72   :  { %2309 = vmatpush.bf16.msrb.mxu0 %v3747_v62  ;;  %v3838_v62 = vld [vmem:[%s4805_s1 + $0x5f0] sm:$0xff] }
  0x73   :  { %2322 = vmatpush.bf16.msrb.mxu1 %v3755_v63  ;;  %v3813_v63 = vld [vmem:[%s4805_s1 + $0x528] sm:$0xff] }
  0x74   :  { %2335 = vmatpush.bf16.msrb.mxu2 %v3763_v0  ;;  %v3821_v0 = vld [vmem:[%s4805_s1 + $0x568] sm:$0xff] }
  0x75   :  { %2348 = vmatpush.bf16.msrb.mxu3 %v3771_v1  ;;  %v3905_v1 = vld [vmem:[%s4806_s2] ss:$0 sm:$0xff] }
  0x76   :  { %2310 = vmatpush.bf16.msrb.mxu0 %v3746_v2  ;;  %v3829_v2 = vld [vmem:[%s4805_s1 + $0x5a8] sm:$0xff] }
  0x77   :  { %2323 = vmatpush.bf16.msrb.mxu1 %v3754_v3  ;;  %v3837_v3 = vld [vmem:[%s4805_s1 + $0x5e8] sm:$0xff] }
  0x78   :  { %2336 = vmatpush.bf16.msrb.mxu2 %v3762_v4 }
  0x79   :  { %2349 = vmatpush.bf16.msrb.mxu3 %v3770_v5  ;;  %v3812_v5 = vld [vmem:[%s4805_s1 + $0x520] sm:$0xff] }
  0x7a   :  { %2311 = vmatpush.bf16.msrb.mxu0 %v3745_v6  ;;  %v3820_v6 = vld [vmem:[%s4805_s1 + $0x560] sm:$0xff] }
  0x7b   :  { %2324 = vmatpush.bf16.msrb.mxu1 %v3753_v7 }
  0x7c   :  { %2337 = vmatpush.bf16.msrb.mxu2 %v3761_v8 }
  0x7d   :  { %2350 = vmatpush.bf16.msrb.mxu3 %v3769_v9  ;;  %v3828_v9 = vld [vmem:[%s4805_s1 + $0x5a0] sm:$0xff] }
  0x7e   :  { %2312 = vmatpush.bf16.msrb.mxu0 %v3744_v15  ;;  %v3835_v15 = vld [vmem:[%s4805_s1 + $0x5d8] sm:$0xff] }
  0x7f   :  { %2325 = vmatpush.bf16.msrb.mxu1 %v3752_v16 }
  0x80   :  { %2338 = vmatpush.bf16.msrb.mxu2 %v3760_v17 }
  0x81   :  { %2351 = vmatpush.bf16.msrb.mxu3 %v3768_v18  ;;  %2313 = vmatmul.bf16.vlgmr.msrb.gmra.mxu0 %v557_v10  ;;  %v3836_v10 = vld [vmem:[%s4805_s1 + $0x5e0] sm:$0xff] }
  0x82   :  { %2357 = vmatpush.bf16.msra.mxu0 %v3783_v19  ;;  %2326 = vmatmul.bf16.vlgmr.msrb.gmra.mxu1 %v558_v12  ;;  %v3811_v12 = vld [vmem:[%s4805_s1 + $0x518] sm:$0xff] }
  0x83   :  { %2370 = vmatpush.bf16.msra.mxu1 %v3791_v20  ;;  %2339 = vmatmul.bf16.vlgmr.msrb.gmra.mxu2 %v559_v11  ;;  %v3810_v20 = vld [vmem:[%s4805_s1 + $0x510] sm:$0xff] }
  0x84   :  { %2383 = vmatpush.bf16.msra.mxu2 %v3799_v21  ;;  %2352 = vmatmul.bf16.vlgmr.msrb.gmra.mxu3 %v560_v13  ;;  %v3819_v13 = vld [vmem:[%s4805_s1 + $0x558] sm:$0xff]  ;;  %v3818_v21 = vld [vmem:[%s4805_s1 + $0x550] sm:$0xff] }
  0x85   :  { %2396 = vmatpush.bf16.msra.mxu3 %v3807_v22 }
  0x86   :  { %2358 = vmatpush.bf16.msra.mxu0 %v3782_v23 }
  0x87   :  { %2371 = vmatpush.bf16.msra.mxu1 %v3790_v24  ;;  %v3826_v24 = vld [vmem:[%s4805_s1 + $0x590] sm:$0xff] }
  0x88   :  { %2384 = vmatpush.bf16.msra.mxu2 %v3798_v25  ;;  %v3834_v25 = vld [vmem:[%s4805_s1 + $0x5d0] sm:$0xff] }
  0x89   :  { %2397 = vmatpush.bf16.msra.mxu3 %v3806_v26  ;;  %v3809_v26 = vld [vmem:[%s4805_s1 + $0x508] sm:$0xff] }
  0x8a   :  { %2359 = vmatpush.bf16.msra.mxu0 %v3781_v27  ;;  %v3817_v27 = vld [vmem:[%s4805_s1 + $0x548] sm:$0xff] }
  0x8b   :  { %2372 = vmatpush.bf16.msra.mxu1 %v3789_v28  ;;  %v3825_v28 = vld [vmem:[%s4805_s1 + $0x588] sm:$0xff] }
  0x8c   :  { %2385 = vmatpush.bf16.msra.mxu2 %v3797_v29  ;;  %v3833_v29 = vld [vmem:[%s4805_s1 + $0x5c8] sm:$0xff] }
  0x8d   :  { %2398 = vmatpush.bf16.msra.mxu3 %v3805_v30  ;;  %v567_v30 = vld [vmem:[#allocation1 + $0x24] sm:$0xff] }
  0x8e   :  { %2360 = vmatpush.bf16.msra.mxu0 %v3780_v31  ;;  %v569_v31 = vld [vmem:[#allocation1 + $0x36] sm:$0xff] }
  0x8f   :  { %2373 = vmatpush.bf16.msra.mxu1 %v3788_v32 }
  0x90   :  { %2386 = vmatpush.bf16.msra.mxu2 %v3796_v33  ;;  %v568_v33 = vld [vmem:[#allocation1 + $0x2d] sm:$0xff] }
  0x91   :  { %2399 = vmatpush.bf16.msra.mxu3 %v3804_v34  ;;  %v570_v34 = vld [vmem:[#allocation1 + $0x3f] sm:$0xff] }
  0x92   :  { %2361 = vmatpush.bf16.msra.mxu0 %v3779_v35 }
  0x93   :  { %2374 = vmatpush.bf16.msra.mxu1 %v3787_v36  ;;  %v24_v36 = vld [vmem:[%s4804_s0 + $0x18] sm:$0xff] }
  0x94   :  { %2387 = vmatpush.bf16.msra.mxu2 %v3795_v37  ;;  %572 = vst [vmem:[#allocation1] ss:$9 sm:$0xff] %v24_v36  ;;  %v3808_v37 = vld [vmem:[%s4805_s1 + $0x500] sm:$0xff]  ;;  %v3901_v36 = vld [vmem:[%s4805_s1 + $0x7e8] sm:$0xff] }
  0x95   :  { %2400 = vmatpush.bf16.msra.mxu3 %v3803_v38  ;;  %v3816_v38 = vld [vmem:[%s4805_s1 + $0x540] sm:$0xff] }
  0x96   :  { %2362 = vmatpush.bf16.msra.mxu0 %v3778_v39  ;;  %v3824_v39 = vld [vmem:[%s4805_s1 + $0x580] sm:$0xff] }
  0x97   :  { %2375 = vmatpush.bf16.msra.mxu1 %v3786_v40  ;;  %v3832_v40 = vld [vmem:[%s4805_s1 + $0x5c0] sm:$0xff] }
  0x98   :  { %2388 = vmatpush.bf16.msra.mxu2 %v3794_v41  ;;  %v3847_v41 = vld [vmem:[%s4805_s1 + $0x638] sm:$0xff] }
  0x99   :  { %2401 = vmatpush.bf16.msra.mxu3 %v3802_v42  ;;  %v3855_v42 = vld [vmem:[%s4805_s1 + $0x678] sm:$0xff] }
  0x9a   :  { %2363 = vmatpush.bf16.msra.mxu0 %v3777_v43  ;;  %v3863_v43 = vld [vmem:[%s4805_s1 + $0x6b8] sm:$0xff] }
  0x9b   :  { %2376 = vmatpush.bf16.msra.mxu1 %v3785_v44  ;;  %v3871_v44 = vld [vmem:[%s4805_s1 + $0x6f8] sm:$0xff] }
  0x9c   :  { %2389 = vmatpush.bf16.msra.mxu2 %v3793_v45  ;;  %v3846_v45 = vld [vmem:[%s4805_s1 + $0x630] sm:$0xff] }
  0x9d   :  { %2402 = vmatpush.bf16.msra.mxu3 %v3801_v46  ;;  %v3854_v46 = vld [vmem:[%s4805_s1 + $0x670] sm:$0xff] }
  0x9e   :  { %2364 = vmatpush.bf16.msra.mxu0 %v3776_v47  ;;  %v2158_v4 = vpop.f32.mrf.mxu0  ;;  %v3862_v47 = vld [vmem:[%s4805_s1 + $0x6b0] sm:$0xff] }
  0x9f   :  { %2377 = vmatpush.bf16.msra.mxu1 %v3784_v48  ;;  %v2159_v7 = vadd.f32 %v3905_v1, %v2158_v4  ;;  %v2171_v8 = vpop.f32.mrf.mxu1  ;;  %v3870_v48 = vld [vmem:[%s4805_s1 + $0x6f0] sm:$0xff] }
  0xa0   :  { %2390 = vmatpush.bf16.msra.mxu2 %v3792_v49  ;;  %v3845_v49 = vld [vmem:[%s4805_s1 + $0x628] sm:$0xff] }
  0xa1   :  { %2403 = vmatpush.bf16.msra.mxu3 %v3800_v50  ;;  %2365 = vmatmul.bf16.vlgmr.msra.gmra.mxu0 %v563_v55  ;;  %v2172_v11 = vadd.f32 %v2171_v8, %v2159_v7  ;;  %v3853_v50 = vld [vmem:[%s4805_s1 + $0x668] sm:$0xff]  ;;  %v3852_v55 = vld [vmem:[%s4805_s1 + $0x660] sm:$0xff] }
  0xa2   :  { %2409 = vmatpush.bf16.msrb.mxu0 %v3815_v51  ;;  %2378 = vmatmul.bf16.vlgmr.msra.gmra.mxu1 %v564_v57  ;;  %v3861_v51 = vld [vmem:[%s4805_s1 + $0x6a8] sm:$0xff] }
  0xa3   :  { %2422 = vmatpush.bf16.msrb.mxu1 %v3823_v52  ;;  %2391 = vmatmul.bf16.vlgmr.msra.gmra.mxu2 %v565_v56  ;;  %v3869_v52 = vld [vmem:[%s4805_s1 + $0x6e8] sm:$0xff] }
  0xa4   :  { %2435 = vmatpush.bf16.msrb.mxu2 %v3831_v53  ;;  %2404 = vmatmul.bf16.vlgmr.msra.gmra.mxu3 %v566_v58  ;;  %v3860_v58 = vld [vmem:[%s4805_s1 + $0x6a0] sm:$0xff] }
  0xa5   :  { %2448 = vmatpush.bf16.msrb.mxu3 %v3839_v54  ;;  %v3844_v54 = vld [vmem:[%s4805_s1 + $0x620] sm:$0xff] }
  0xa6   :  { %2410 = vmatpush.bf16.msrb.mxu0 %v3814_v59  ;;  %v2184_v16 = vpop.f32.mrf.mxu2  ;;  %v2160_v19 = vpop.f32.mrf.mxu0  ;;  %v3868_v59 = vld [vmem:[%s4805_s1 + $0x6e0] sm:$0xff] }
  0xa7   :  { %2423 = vmatpush.bf16.msrb.mxu1 %v3822_v60  ;;  %v2185_v17 = vadd.f32 %v2184_v16, %v2172_v11  ;;  %v2197_v18 = vpop.f32.mrf.mxu3  ;;  %v2173_v23 = vpop.f32.mrf.mxu1  ;;  %v3841_v11 = vld [vmem:[%s4805_s1 + $0x608] sm:$0xff]  ;;  %v3856_v19 = vld [vmem:[%s4805_s1 + $0x680] sm:$0xff] }
  0xa8   :  { %2436 = vmatpush.bf16.msrb.mxu2 %v3830_v61  ;;  %v3843_v61 = vld [vmem:[%s4805_s1 + $0x618] sm:$0xff] }
  0xa9   :  { %2449 = vmatpush.bf16.msrb.mxu3 %v3838_v62  ;;  %v4522_v22 = vadd.f32 %v2197_v18, %v2185_v17  ;;  %v3851_v62 = vld [vmem:[%s4805_s1 + $0x658] sm:$0xff]  ;;  %v3840_v17 = vld [vmem:[%s4805_s1 + $0x600] sm:$0xff] }
  0xaa   :  { %2411 = vmatpush.bf16.msrb.mxu0 %v3813_v63  ;;  %v3859_v63 = vld [vmem:[%s4805_s1 + $0x698] sm:$0xff]  ;;  %v3848_v18 = vld [vmem:[%s4805_s1 + $0x640] sm:$0xff] }
  0xab   :  { %2424 = vmatpush.bf16.msrb.mxu1 %v3821_v0  ;;  %v3867_v0 = vld [vmem:[%s4805_s1 + $0x6d8] sm:$0xff] }
  0xac   :  { %2437 = vmatpush.bf16.msrb.mxu2 %v3829_v2  ;;  %v3895_v23 = vld [vmem:[%s4805_s1 + $0x7b8] sm:$0xff] }
  0xad   :  { %2450 = vmatpush.bf16.msrb.mxu3 %v3837_v3 }
  0xae   :  { %2412 = vmatpush.bf16.msrb.mxu0 %v3812_v5  ;;  %v2186_v32 = vpop.f32.mrf.mxu2  ;;  %v3842_v5 = vld [vmem:[%s4805_s1 + $0x610] sm:$0xff] }
  0xaf   :  { %2425 = vmatpush.bf16.msrb.mxu1 %v3820_v6  ;;  %v2199_v35 = vpop.f32.mrf.mxu3  ;;  %v3850_v6 = vld [vmem:[%s4805_s1 + $0x650] sm:$0xff] }
  0xb0   :  { %2438 = vmatpush.bf16.msrb.mxu2 %v3828_v9  ;;  %v3858_v9 = vld [vmem:[%s4805_s1 + $0x690] sm:$0xff]  ;;  %v3893_v35 = vld [vmem:[%s4805_s1 + $0x7a8] sm:$0xff] }
  0xb1   :  { %2451 = vmatpush.bf16.msrb.mxu3 %v3836_v10  ;;  %v3866_v10 = vld [vmem:[%s4805_s1 + $0x6d0] sm:$0xff] }
  0xb2   :  { %2413 = vmatpush.bf16.msrb.mxu0 %v3811_v12  ;;  %v3849_v12 = vld [vmem:[%s4805_s1 + $0x648] sm:$0xff]  ;;  %v3902_v32 = vld [vmem:[%s4805_s1 + $0x7f0] sm:$0xff] }
  0xb3   :  { %2426 = vmatpush.bf16.msrb.mxu1 %v3819_v13  ;;  %v3857_v13 = vld [vmem:[%s4805_s1 + $0x688] sm:$0xff] }
  0xb4   :  { %2439 = vmatpush.bf16.msrb.mxu2 %v3827_v14  ;;  %v3865_v14 = vld [vmem:[%s4805_s1 + $0x6c8] sm:$0xff] }
  0xb5   :  { %2452 = vmatpush.bf16.msrb.mxu3 %v3835_v15 }
  0xb6   :  { %2414 = vmatpush.bf16.msrb.mxu0 %v3810_v20  ;;  %v3864_v20 = vld [vmem:[%s4805_s1 + $0x6c0] sm:$0xff] }
  0xb7   :  { %2427 = vmatpush.bf16.msrb.mxu1 %v3818_v21  ;;  %v3879_v21 = vld [vmem:[%s4805_s1 + $0x738] sm:$0xff] }
  0xb8   :  { %2440 = vmatpush.bf16.msrb.mxu2 %v3826_v24  ;;  %v3903_v24 = vld [vmem:[%s4805_s1 + $0x7f8] sm:$0xff] }
  0xb9   :  { %2453 = vmatpush.bf16.msrb.mxu3 %v3834_v25  ;;  %v573_v25 = vld [vmem:[#allocation1] sm:$0xff] }
  0xba   :  { %2415 = vmatpush.bf16.msrb.mxu0 %v3809_v26  ;;  %v575_v26 = vld [vmem:[#allocation1 + $0x12] sm:$0xff] }
  0xbb   :  { %2428 = vmatpush.bf16.msrb.mxu1 %v3817_v27  ;;  %v574_v27 = vld [vmem:[#allocation1 + $0x9] sm:$0xff] }
  0xbc   :  { %2441 = vmatpush.bf16.msrb.mxu2 %v3825_v28  ;;  %v576_v28 = vld [vmem:[#allocation1 + $0x1b] sm:$0xff] }
  0xbd   :  { %2454 = vmatpush.bf16.msrb.mxu3 %v3833_v29  ;;  %v3878_v29 = vld [vmem:[%s4805_s1 + $0x730] sm:$0xff] }
  0xbe   :  { %2416 = vmatpush.bf16.msrb.mxu0 %v3808_v37  ;;  %v2210_v53 = vpop.f32.mrf.mxu0 }
  0xbf   :  { %2429 = vmatpush.bf16.msrb.mxu1 %v3816_v38  ;;  %v2211_v56 = vadd.f32 %v2210_v53, %v4522_v22  ;;  %v2223_v57 = vpop.f32.mrf.mxu1  ;;  %v3887_v22 = vld [vmem:[%s4805_s1 + $0x778] sm:$0xff] }
  0xc0   :  { %2442 = vmatpush.bf16.msrb.mxu2 %v3824_v39  ;;  %v3876_v39 = vld [vmem:[%s4805_s1 + $0x720] sm:$0xff] }
  0xc1   :  { %2455 = vmatpush.bf16.msrb.mxu3 %v3832_v40  ;;  %2417 = vmatmul.bf16.vlgmr.msrb.gmra.mxu0 %v567_v30  ;;  %v2224_v60 = vadd.f32 %v2223_v57, %v2211_v56  ;;  %v3886_v30 = vld [vmem:[%s4805_s1 + $0x770] sm:$0xff]  ;;  %v3884_v40 = vld [vmem:[%s4805_s1 + $0x760] sm:$0xff] }
  0xc2   :  { %2461 = vmatpush.bf16.msra.mxu0 %v3847_v41  ;;  %2430 = vmatmul.bf16.vlgmr.msrb.gmra.mxu1 %v568_v33  ;;  %v3877_v33 = vld [vmem:[%s4805_s1 + $0x728] sm:$0xff]  ;;  %v3890_v57 = vld [vmem:[%s4805_s1 + $0x790] sm:$0xff] }
  0xc3   :  { %2474 = vmatpush.bf16.msra.mxu1 %v3855_v42  ;;  %2443 = vmatmul.bf16.vlgmr.msrb.gmra.mxu2 %v569_v31  ;;  %v3894_v31 = vld [vmem:[%s4805_s1 + $0x7b0] sm:$0xff]  ;;  %v3892_v42 = vld [vmem:[%s4805_s1 + $0x7a0] sm:$0xff] }
  0xc4   :  { %2487 = vmatpush.bf16.msra.mxu2 %v3863_v43  ;;  %2456 = vmatmul.bf16.vlgmr.msrb.gmra.mxu3 %v570_v34  ;;  %v3885_v34 = vld [vmem:[%s4805_s1 + $0x768] sm:$0xff]  ;;  %v3900_v43 = vld [vmem:[%s4805_s1 + $0x7e0] sm:$0xff] }
  0xc5   :  { %2500 = vmatpush.bf16.msra.mxu3 %v3871_v44 }
  0xc6   :  { %2462 = vmatpush.bf16.msra.mxu0 %v3846_v45  ;;  %v2236_v1 = vpop.f32.mrf.mxu2  ;;  %v2212_v4 = vpop.f32.mrf.mxu0  ;;  %v3875_v45 = vld [vmem:[%s4805_s1 + $0x718] sm:$0xff] }
  0xc7   :  { %2475 = vmatpush.bf16.msra.mxu1 %v3854_v46  ;;  %v2237_v2 = vadd.f32 %v2236_v1, %v2224_v60  ;;  %v2249_v3 = vpop.f32.mrf.mxu3  ;;  %v2225_v8 = vpop.f32.mrf.mxu1  ;;  %v3883_v46 = vld [vmem:[%s4805_s1 + $0x758] sm:$0xff]  ;;  %v3881_v60 = vld [vmem:[%s4805_s1 + $0x748] sm:$0xff]  ;;  %v3872_v1 = vld [vmem:[%s4805_s1 + $0x700] sm:$0xff] }
  0xc8   :  { %2488 = vmatpush.bf16.msra.mxu2 %v3862_v47  ;;  %v3891_v47 = vld [vmem:[%s4805_s1 + $0x798] sm:$0xff]  ;;  %v3896_v4 = vld [vmem:[%s4805_s1 + $0x7c0] sm:$0xff] }
  0xc9   :  { %2501 = vmatpush.bf16.msra.mxu3 %v3870_v48  ;;  %v2250_v7 = vadd.f32 %v2249_v3, %v2237_v2  ;;  %v3899_v48 = vld [vmem:[%s4805_s1 + $0x7d8] sm:$0xff]  ;;  %v3880_v2 = vld [vmem:[%s4805_s1 + $0x740] sm:$0xff] }
  0xca   :  { %2463 = vmatpush.bf16.msra.mxu0 %v3845_v49  ;;  %v3888_v3 = vld [vmem:[%s4805_s1 + $0x780] sm:$0xff] }
  0xcb   :  { %2476 = vmatpush.bf16.msra.mxu1 %v3853_v50  ;;  %v580_v8 = vld [vmem:[#allocation1 + $0x3f] sm:$0xff] }
  0xcc   :  { %2489 = vmatpush.bf16.msra.mxu2 %v3861_v51 }
  0xcd   :  { %2502 = vmatpush.bf16.msra.mxu3 %v3869_v52 }
  0xce   :  { %2464 = vmatpush.bf16.msra.mxu0 %v3844_v54  ;;  %v2238_v15 = vpop.f32.mrf.mxu2  ;;  %v3874_v54 = vld [vmem:[%s4805_s1 + $0x710] sm:$0xff] }
  0xcf   :  { %2477 = vmatpush.bf16.msra.mxu1 %v3852_v55  ;;  %v2251_v16 = vpop.f32.mrf.mxu3  ;;  %v3882_v55 = vld [vmem:[%s4805_s1 + $0x750] sm:$0xff] }
  0xd0   :  { %2490 = vmatpush.bf16.msra.mxu2 %v3860_v58  ;;  %v3898_v58 = vld [vmem:[%s4805_s1 + $0x7d0] sm:$0xff] }
  0xd1   :  { %2503 = vmatpush.bf16.msra.mxu3 %v3868_v59  ;;  %v3873_v59 = vld [vmem:[%s4805_s1 + $0x708] sm:$0xff] }
  0xd2   :  { %2465 = vmatpush.bf16.msra.mxu0 %v3843_v61  ;;  %v3889_v61 = vld [vmem:[%s4805_s1 + $0x788] sm:$0xff] }
  0xd3   :  { %2478 = vmatpush.bf16.msra.mxu1 %v3851_v62  ;;  %v3897_v62 = vld [vmem:[%s4805_s1 + $0x7c8] sm:$0xff] }
  0xd4   :  { %2491 = vmatpush.bf16.msra.mxu2 %v3859_v63 }
  0xd5   :  { %2504 = vmatpush.bf16.msra.mxu3 %v3867_v0 }
  0xd6   :  { %2466 = vmatpush.bf16.msra.mxu0 %v3842_v5  ;;  %v577_v5 = vld [vmem:[#allocation1 + $0x24] sm:$0xff] }
  0xd7   :  { %2479 = vmatpush.bf16.msra.mxu1 %v3850_v6  ;;  %v578_v6 = vld [vmem:[#allocation1 + $0x2d] sm:$0xff] }
  0xd8   :  { %2492 = vmatpush.bf16.msra.mxu2 %v3858_v9 }
  0xd9   :  { %2505 = vmatpush.bf16.msra.mxu3 %v3866_v10 }
  0xda   :  { %2467 = vmatpush.bf16.msra.mxu0 %v3841_v11 }
  0xdb   :  { %2480 = vmatpush.bf16.msra.mxu1 %v3849_v12 }
  0xdc   :  { %2493 = vmatpush.bf16.msra.mxu2 %v3857_v13 }
  0xdd   :  { %2506 = vmatpush.bf16.msra.mxu3 %v3865_v14 }
  0xde   :  { %2468 = vmatpush.bf16.msra.mxu0 %v3840_v17  ;;  %v2262_v37 = vpop.f32.mrf.mxu0 }
  0xdf   :  { %2481 = vmatpush.bf16.msra.mxu1 %v3848_v18  ;;  %v2263_v38 = vadd.f32 %v2262_v37, %v2250_v7  ;;  %v2275_v41 = vpop.f32.mrf.mxu1  ;;  %v579_v7 = vld [vmem:[#allocation1 + $0x36] sm:$0xff] }
  0xe0   :  { %2494 = vmatpush.bf16.msra.mxu2 %v3856_v19  ;;  %v2581_v37 = vld [vmem:[%s4807_s3 + $0x78] sm:$0xff] }
  0xe1   :  { %2507 = vmatpush.bf16.msra.mxu3 %v3864_v20  ;;  %2469 = vmatmul.bf16.vlgmr.msra.gmra.mxu0 %v573_v25  ;;  %v2276_v44 = vadd.f32 %v2275_v41, %v2263_v38  ;;  %v2580_v38 = vld [vmem:[%s4807_s3 + $0x70] sm:$0xff]  ;;  %v2579_v41 = vld [vmem:[%s4807_s3 + $0x68] sm:$0xff] }
  0xe2   :  { %2513 = vmatpush.bf16.msrb.mxu0 %v3879_v21  ;;  %2482 = vmatmul.bf16.vlgmr.msra.gmra.mxu1 %v574_v27 }
  0xe3   :  { %2526 = vmatpush.bf16.msrb.mxu1 %v3887_v22  ;;  %2495 = vmatmul.bf16.vlgmr.msra.gmra.mxu2 %v575_v26 }
  0xe4   :  { %2539 = vmatpush.bf16.msrb.mxu2 %v3895_v23  ;;  %2508 = vmatmul.bf16.vlgmr.msra.gmra.mxu3 %v576_v28 }
  0xe5   :  { %2552 = vmatpush.bf16.msrb.mxu3 %v3903_v24 }
  0xe6   :  { %2514 = vmatpush.bf16.msrb.mxu0 %v3878_v29  ;;  %v2288_v49 = vpop.f32.mrf.mxu2  ;;  %v2264_v52 = vpop.f32.mrf.mxu0 }
  0xe7   :  { %2527 = vmatpush.bf16.msrb.mxu1 %v3886_v30  ;;  %v2289_v50 = vadd.f32 %v2288_v49, %v2276_v44  ;;  %v2301_v51 = vpop.f32.mrf.mxu3  ;;  %v2277_v56 = vpop.f32.mrf.mxu1  ;;  %v2573_v49 = vld [vmem:[%s4807_s3 + $0x38] sm:$0xff] }
  0xe8   :  { %2540 = vmatpush.bf16.msrb.mxu2 %v3894_v31  ;;  %v2568_v56 = vld [vmem:[%s4807_s3 + $0x10] sm:$0xff] }
  0xe9   :  { %2553 = vmatpush.bf16.msrb.mxu3 %v3902_v32  ;;  %v2302_v53 = vadd.f32 %v2301_v51, %v2289_v50  ;;  %v2572_v50 = vld [vmem:[%s4807_s3 + $0x30] sm:$0xff]  ;;  %v2571_v51 = vld [vmem:[%s4807_s3 + $0x28] sm:$0xff] }
  0xea   :  { %2515 = vmatpush.bf16.msrb.mxu0 %v3877_v33 }
  0xeb   :  { %2528 = vmatpush.bf16.msrb.mxu1 %v3885_v34 }
  0xec   :  { %2541 = vmatpush.bf16.msrb.mxu2 %v3893_v35 }
  0xed   :  { %2554 = vmatpush.bf16.msrb.mxu3 %v3901_v36 }
  0xee   :  { %2516 = vmatpush.bf16.msrb.mxu0 %v3876_v39  ;;  %v2290_v63 = vpop.f32.mrf.mxu2 }
  0xef   :  { %2529 = vmatpush.bf16.msrb.mxu1 %v3884_v40  ;;  %v2303_v0 = vpop.f32.mrf.mxu3  ;;  %v2566_v63 = vld [vmem:[%s4807_s3] sm:$0xff] }
  0xf0   :  { %2542 = vmatpush.bf16.msrb.mxu2 %v3892_v42  ;;  %v2578_v42 = vld [vmem:[%s4807_s3 + $0x60] sm:$0xff] }
  0xf1   :  { %2555 = vmatpush.bf16.msrb.mxu3 %v3900_v43  ;;  %v2577_v43 = vld [vmem:[%s4807_s3 + $0x58] sm:$0xff] }
  0xf2   :  { %2517 = vmatpush.bf16.msrb.mxu0 %v3875_v45 }
  0xf3   :  { %2530 = vmatpush.bf16.msrb.mxu1 %v3883_v46  ;;  %v2576_v46 = vld [vmem:[%s4807_s3 + $0x50] sm:$0xff] }
  0xf4   :  { %2543 = vmatpush.bf16.msrb.mxu2 %v3891_v47  ;;  %v2575_v47 = vld [vmem:[%s4807_s3 + $0x48] sm:$0xff] }
  0xf5   :  { %2556 = vmatpush.bf16.msrb.mxu3 %v3899_v48  ;;  %v2574_v48 = vld [vmem:[%s4807_s3 + $0x40] sm:$0xff] }
  0xf6   :  { %2518 = vmatpush.bf16.msrb.mxu0 %v3874_v54 }
  0xf7   :  { %2531 = vmatpush.bf16.msrb.mxu1 %v3882_v55  ;;  %v2569_v55 = vld [vmem:[%s4807_s3 + $0x18] sm:$0xff] }
  0xf8   :  { %2544 = vmatpush.bf16.msrb.mxu2 %v3890_v57 }
  0xf9   :  { %2557 = vmatpush.bf16.msrb.mxu3 %v3898_v58 }
  0xfa   :  { %2519 = vmatpush.bf16.msrb.mxu0 %v3873_v59 }
  0xfb   :  { %2532 = vmatpush.bf16.msrb.mxu1 %v3881_v60  ;;  %v2567_v60 = vld [vmem:[%s4807_s3 + $0x8] sm:$0xff] }
  0xfc   :  { %2545 = vmatpush.bf16.msrb.mxu2 %v3889_v61 }
  0xfd   :  { %2558 = vmatpush.bf16.msrb.mxu3 %v3897_v62 }
  0xfe   :  { %2520 = vmatpush.bf16.msrb.mxu0 %v3872_v1  ;;  %v2314_v9 = vpop.f32.mrf.mxu0 }
  0xff   :  { %2533 = vmatpush.bf16.msrb.mxu1 %v3880_v2  ;;  %v2315_v10 = vadd.f32 %v2314_v9, %v2302_v53  ;;  %v2327_v11 = vpop.f32.mrf.mxu1  ;;  %v2570_v53 = vld [vmem:[%s4807_s3 + $0x20] sm:$0xff] }
 0x100   :  { %2546 = vmatpush.bf16.msrb.mxu2 %v3888_v3 }
 0x101   :  { %2559 = vmatpush.bf16.msrb.mxu3 %v3896_v4  ;;  %2521 = vmatmul.bf16.vlgmr.msrb.gmra.mxu0 %v577_v5  ;;  %v2328_v12 = vadd.f32 %v2327_v11, %v2315_v10 }
 0x102   :  { %2534 = vmatmul.bf16.vlgmr.msrb.gmra.mxu1 %v578_v6  ;;  %2586 = vmatpush.msra.mxu0 %v2581_v37 }
 0x103   :  { %2547 = vmatmul.bf16.vlgmr.msrb.gmra.mxu2 %v579_v7 }
 0x104   :  { %2560 = vmatmul.bf16.vlgmr.msrb.gmra.mxu3 %v580_v8  ;;  %2587 = vmatpush.msra.mxu0 %v2580_v38 }
 0x106   :  { %v2340_v13 = vpop.f32.mrf.mxu2  ;;  %v2316_v16 = vpop.f32.mrf.mxu0  ;;  %2588 = vmatpush.msra.mxu0 %v2579_v41 }
 0x107   :  { %v2341_v14 = vadd.f32 %v2340_v13, %v2328_v12  ;;  %v2353_v15 = vpop.f32.mrf.mxu3  ;;  %v2329_v18 = vpop.f32.mrf.mxu1 }
 0x108   :  { %2589 = vmatpush.msra.mxu0 %v2578_v42 }
 0x109   :  { %v2354_v17 = vadd.f32 %v2353_v15, %v2341_v14 }
 0x10a   :  { %2590 = vmatpush.msra.mxu0 %v2577_v43 }
 0x10c   :  { %2591 = vmatpush.msra.mxu0 %v2576_v46 }
 0x10e   :  { %v2342_v19 = vpop.f32.mrf.mxu2  ;;  %2592 = vmatpush.msra.mxu0 %v2575_v47 }
 0x10f   :  { %v2355_v20 = vpop.f32.mrf.mxu3 }
 0x110   :  { %2593 = vmatpush.msra.mxu0 %v2574_v48 }
 0x112   :  { %2594 = vmatpush.msra.mxu0 %v2573_v49 }
 0x114   :  { %2595 = vmatpush.msra.mxu0 %v2572_v50 }
 0x116   :  { %2596 = vmatpush.msra.mxu0 %v2571_v51 }
 0x118   :  { %2597 = vmatpush.msra.mxu0 %v2570_v53 }
 0x11a   :  { %2598 = vmatpush.msra.mxu0 %v2569_v55 }
 0x11c   :  { %2599 = vmatpush.msra.mxu0 %v2568_v56 }
 0x11e   :  { %v2366_v21 = vpop.f32.mrf.mxu0  ;;  %2600 = vmatpush.msra.mxu0 %v2567_v60 }
 0x11f   :  { %v2367_v22 = vadd.f32 %v2366_v21, %v2354_v17  ;;  %v2379_v23 = vpop.f32.mrf.mxu1 }
 0x120   :  { %2601 = vmatpush.msra.mxu0 %v2566_v63 }
 0x121   :  { %v2380_v24 = vadd.f32 %v2379_v23, %v2367_v22  ;;  %v3906_v22 = vld [vmem:[%s4808_s4] ss:$0 sm:$0xff] }
 0x126   :  { %v2392_v25 = vpop.f32.mrf.mxu2  ;;  %v2368_v28 = vpop.f32.mrf.mxu0 }
 0x127   :  { %v2393_v26 = vadd.f32 %v2392_v25, %v2380_v24  ;;  %v2405_v27 = vpop.f32.mrf.mxu3  ;;  %v2381_v30 = vpop.f32.mrf.mxu1 }
 0x129   :  { %v2406_v29 = vadd.f32 %v2405_v27, %v2393_v26 }
 0x12e   :  { %v2394_v31 = vpop.f32.mrf.mxu2 }
 0x12f   :  { %v2407_v32 = vpop.f32.mrf.mxu3 }
 0x13e   :  { %v2418_v33 = vpop.f32.mrf.mxu0 }
 0x13f   :  { %v2431_v34 = vpop.f32.mrf.mxu1  ;;  %v2419_v58 = vadd.f32 %v2418_v33, %v2406_v29 }
 0x141   :  { %v2432_v0 = vadd.f32 %v2431_v34, %v2419_v58 }
 0x146   :  { %v2444_v35 = vpop.f32.mrf.mxu2  ;;  %v2420_v39 = vpop.f32.mrf.mxu0 }
 0x147   :  { %v2457_v36 = vpop.f32.mrf.mxu3  ;;  %v2433_v40 = vpop.f32.mrf.mxu1  ;;  %v2445_v1 = vadd.f32 %v2444_v35, %v2432_v0 }
 0x149   :  { %v2458_v4 = vadd.f32 %v2457_v36, %v2445_v1 }
 0x14e   :  { %v2446_v44 = vpop.f32.mrf.mxu2 }
 0x14f   :  { %v2459_v45 = vpop.f32.mrf.mxu3 }
 0x15e   :  { %v2470_v52 = vpop.f32.mrf.mxu0 }
 0x15f   :  { %v2483_v54 = vpop.f32.mrf.mxu1  ;;  %v2471_v5 = vadd.f32 %v2470_v52, %v2458_v4 }
 0x161   :  { %v2484_v6 = vadd.f32 %v2483_v54, %v2471_v5 }
 0x166   :  { %v2496_v57 = vpop.f32.mrf.mxu2  ;;  %v2472_v61 = vpop.f32.mrf.mxu0 }
 0x167   :  { %v2509_v59 = vpop.f32.mrf.mxu3  ;;  %v2485_v62 = vpop.f32.mrf.mxu1  ;;  %v2497_v7 = vadd.f32 %v2496_v57, %v2484_v6 }
 0x169   :  { %v2510_v8 = vadd.f32 %v2509_v59, %v2497_v7 }
 0x16e   :  { %v2498_v2 = vpop.f32.mrf.mxu2 }
 0x16f   :  { %v2511_v3 = vpop.f32.mrf.mxu3 }
 0x17e   :  { %v2522_v9 = vpop.f32.mrf.mxu0 }
 0x17f   :  { %v2535_v10 = vpop.f32.mrf.mxu1  ;;  %v2523_v11 = vadd.f32 %v2522_v9, %v2510_v8 }
 0x181   :  { %v2536_v12 = vadd.f32 %v2535_v10, %v2523_v11 }
 0x186   :  { %v2548_v13 = vpop.f32.mrf.mxu2  ;;  %v2524_v16 = vpop.f32.mrf.mxu0 }
 0x187   :  { %v2561_v14 = vpop.f32.mrf.mxu3  ;;  %v2549_v15 = vadd.f32 %v2548_v13, %v2536_v12  ;;  %v2537_v17 = vpop.f32.mrf.mxu1 }
 0x189   :  { %v2562_v18 = vadd.f32 %v2561_v14, %v2549_v15 }
 0x18b   :  { %v2565_v19 = vmax.f32 %v2562_v18, 0.0 }
 0x18d   :  { %2602 = vmatmul.f32.vlgmr.msra.gmra.mxu0 %v2565_v19 }
 0x18e   :  { %v2550_v20 = vpop.f32.mrf.mxu2 }
 0x18f   :  { %v2563_v21 = vpop.f32.mrf.mxu3 }
 0x20a   :  { %v2603_v23 = vpop.f32.mrf.mxu0 }
 0x20b   :  { %v2604_v24 = vadd.f32 %v3906_v22, %v2603_v23 }
 0x20d   :  { %2607 = vst.msk [vmem:[#allocation2] sm:$0x3] %vm2606_vm0, %v2604_v24 }
 0x20e   :  { %2618 = dma.vmem_to_hbm [thread:$0]  %s2614_s8, 32, %s2616_s10, [#allocation3]  }
 0x20f   :  { %3931 = dma.done.wait [#allocation3], 32  }
 0x210   :  { %3932 = vsyncadd [#allocation3], 4294967264 }
 0x211   :  { %2623 = vsyncpa [#allocation3], 1 }

</bundles_post_ra>
